<compile_context>
chip_gen: v5e
topology: v5e:2x2
jax: 0.10.0
libtpu: 0.0.40
codegen_flags: <defaults>
</compile_context>

<pallas_src>
import jax
import jax.numpy as jnp
from jax.experimental import pallas as pl
from jax.experimental.pallas import tpu as pltpu

# ----------------------------- model config (small) -----------------------------
VOCAB_SIZE = 128
EMB_DIM = 32
HID_DIM = 32
GATE_DIM = 4 * HID_DIM        # 128: all four gates share one 128-lane tile
NUM_LAYERS = 2
BATCH = 2
BATCH_PAD = 8                 # pad batch to a full sublane tile
SEQ = 8


# ----------------------------- fused kernel --------------------------------------
def _fused_lstm_kernel(x_ref, wih0_ref, whh0_ref, b0_ref,
                       wih1_ref, whh1_ref, b1_ref,
                       h0_ref, c0_ref, fcw_ref, fcb_ref,
                       logits_ref, hn_ref, cn_ref,
                       y_sc, g_sc, h_sc, c_sc):
    """Single-invocation kernel: 2 LSTM layers + FC, everything VMEM-resident.

    x_ref   : (T*BP, E)   bf16 time-major embedded input (row = t*BP + b)
    wih*    : (Din, 4H)   bf16 input->gates (gate g in lanes [g*H,(g+1)*H))
    whh*    : (H, 4H)     bf16 hidden->gates
    b*      : (1, 4H)     f32 combined bias (b_ih + b_hh)
    h0/c0   : (L, BP, H)  f32 initial state (batch zero-padded to BP)
    fcw     : (H, V) bf16, fcb: (1, V) f32
    logits  : (T*BP, V)   f32
    hn/cn   : (L, BP, H)  f32 final state
    y_sc    : (T*BP, H)   layer output buffer (stays in VMEM between layers)
    g_sc    : (T*BP, 4H)  hoisted input-projection (+bias) for all timesteps
    h_sc/c_sc: (BP, H)    recurrent state carried across timesteps
    """
    TBP = x_ref.shape[0]
    BP, H = h_sc.shape
    GP = 4 * H
    T = TBP // BP

    # Lane mask for the activation split: tanh on the g-gate lanes, sigmoid on
    # the rest.  Built once (outside both loops) on full (BP, GP) vregs.
    lane = jax.lax.broadcasted_iota(jnp.int32, (BP, GP), 1)
    is_g_lane = jnp.logical_and(lane >= 2 * H, lane < 3 * H)

    layers = ((wih0_ref, whh0_ref, b0_ref), (wih1_ref, whh1_ref, b1_ref))

    for layer, (wih, whh, b) in enumerate(layers):
        # Input to this layer: embedded tokens (layer 0) or previous layer output.
        x2d = x_ref[...] if layer == 0 else y_sc[...].astype(jnp.bfloat16)

        # Hoisted input projection for ALL timesteps, bias folded in.
        # One (T*BP, Din) x (Din, 4H) bf16 MXU matmul instead of T tiny ones.
        g_sc[...] = (jnp.dot(x2d, wih[...], preferred_element_type=jnp.float32)
                     + b[...])

        h_sc[...] = h0_ref[layer]
        c_sc[...] = c0_ref[layer]

        # Sequential recurrence: only h @ W_hh (one 32x128 bf16 tile) remains on
        # the critical path.  T=8, fully unrolled (static); all row offsets are
        # multiples of 8 sublanes.
        for t in range(T):
            rows = pl.ds(t * BP, BP)
            gates = g_sc[rows, :] + jnp.dot(h_sc[...].astype(jnp.bfloat16),
                                            whh[...],
                                            preferred_element_type=jnp.float32)
            # Full-vreg transcendentals, then select by lane (EUP: 2 passes not 4).
            act = jnp.where(is_g_lane, jnp.tanh(gates), jax.nn.sigmoid(gates))
            i_g = act[:, 0 * H:1 * H]
            f_g = act[:, 1 * H:2 * H]
            g_g = act[:, 2 * H:3 * H]
            o_g = act[:, 3 * H:4 * H]

            c_new = f_g * c_sc[...] + i_g * g_g
            h_new = o_g * jnp.tanh(c_new)

            c_sc[...] = c_new
            h_sc[...] = h_new
            y_sc[rows, :] = h_new               # sublane-aligned full-tile store

        # Final state stored once per layer (not every timestep).
        hn_ref[layer] = h_sc[...].astype(hn_ref.dtype)
        cn_ref[layer] = c_sc[...].astype(cn_ref.dtype)

    # Final FC over all timesteps in one lane-dense bf16 matmul.
    logits_ref[...] = (jnp.dot(y_sc[...].astype(jnp.bfloat16), fcw_ref[...],
                               preferred_element_type=jnp.float32)
                       + fcb_ref[...]).astype(logits_ref.dtype)


# ----------------------------- wrapper --------------------------------------------
def lstm_model_forward(packed, tokens, hidden):
    """tokens: (B, T) int32; hidden: tuple of (L, B, H) arrays.
    Returns (logits (B, T, V), (h_n, c_n))."""
    h0, c0 = hidden
    B, T = tokens.shape
    BP = BATCH_PAD

    # Embedding gather + time-major flatten + batch pad (plain JAX glue).
    emb = jnp.take(packed["embedding"], tokens, axis=0)              # (B, T, E)
    x = jnp.transpose(emb, (1, 0, 2))                                # (T, B, E)
    x = jnp.pad(x, ((0, 0), (0, BP - B), (0, 0)))                    # (T, BP, E)
    x2d = x.reshape(T * BP, EMB_DIM).astype(jnp.bfloat16)            # (T*BP, E)

    h0_p = jnp.pad(h0.astype(jnp.float32), ((0, 0), (0, BP - B), (0, 0)))
    c0_p = jnp.pad(c0.astype(jnp.float32), ((0, 0), (0, BP - B), (0, 0)))

    vmem = pl.BlockSpec(memory_space=pltpu.MemorySpace.VMEM)
    logits2d, hn_p, cn_p = pl.pallas_call(
        _fused_lstm_kernel,
        out_shape=(
            jax.ShapeDtypeStruct((T * BP, VOCAB_SIZE), jnp.float32),
            jax.ShapeDtypeStruct((NUM_LAYERS, BP, HID_DIM), jnp.float32),
            jax.ShapeDtypeStruct((NUM_LAYERS, BP, HID_DIM), jnp.float32),
        ),
        in_specs=[vmem] * 11,
        out_specs=(vmem, vmem, vmem),
        scratch_shapes=[
            pltpu.VMEM((T * BP, HID_DIM), jnp.float32),       # y_sc
            pltpu.VMEM((T * BP, GATE_DIM), jnp.float32),      # g_sc
            pltpu.VMEM((BP, HID_DIM), jnp.float32),           # h_sc
            pltpu.VMEM((BP, HID_DIM), jnp.float32),           # c_sc
        ],
    )(x2d,
      packed["w_ih_p_0"], packed["w_hh_p_0"], packed["b_p_0"],
      packed["w_ih_p_1"], packed["w_hh_p_1"], packed["b_p_1"],
      h0_p, c0_p, packed["fc_w_p"], packed["fc_b"])

    logits = (logits2d.reshape(T, BP, VOCAB_SIZE)[:, :B, :]
              .transpose(1, 0, 2))                                   # (B, T, V)
    h_n = hn_p[:, :B, :]
    c_n = cn_p[:, :B, :]
    return logits, (h_n, c_n)


# ----------------------------- params ----------------------------------------------
def init_params(key):
    """Raw PyTorch-layout parameters."""
    keys = jax.random.split(key, 1 + 4 * NUM_LAYERS + 2)
    params = {}
    params["embedding"] = jax.random.normal(keys[0], (VOCAB_SIZE, EMB_DIM),
                                            jnp.float32)
    k = 1.0 / jnp.sqrt(jnp.float32(HID_DIM))
    idx = 1
    for layer in range(NUM_LAYERS):
        in_dim = EMB_DIM if layer == 0 else HID_DIM
        params[f"w_ih_{layer}"] = jax.random.uniform(
            keys[idx], (4 * HID_DIM, in_dim), jnp.float32, -k, k); idx += 1
        params[f"w_hh_{layer}"] = jax.random.uniform(
            keys[idx], (4 * HID_DIM, HID_DIM), jnp.float32, -k, k); idx += 1
        params[f"b_ih_{layer}"] = jax.random.uniform(
            keys[idx], (4 * HID_DIM,), jnp.float32, -k, k); idx += 1
        params[f"b_hh_{layer}"] = jax.random.uniform(
            keys[idx], (4 * HID_DIM,), jnp.float32, -k, k); idx += 1
    params["fc_w"] = jax.random.uniform(keys[idx], (VOCAB_SIZE, HID_DIM),
                                        jnp.float32, -k, k); idx += 1
    params["fc_b"] = jax.random.uniform(keys[idx], (VOCAB_SIZE,),
                                        jnp.float32, -k, k); idx += 1
    return params


def pack_params(raw):
    """Transpose weights to (in, 4H) gate-packed layout and cast to bf16.

    PyTorch's gate order (i, f, g, o) is kept as contiguous H-lane blocks inside
    one 128-lane tile (4*H == 128), so no per-gate column remapping is needed.
    """
    packed = {"embedding": raw["embedding"]}
    for layer in range(NUM_LAYERS):
        w_ih = raw[f"w_ih_{layer}"]                  # (4H, in)
        w_hh = raw[f"w_hh_{layer}"]                  # (4H, H)
        bias = raw[f"b_ih_{layer}"] + raw[f"b_hh_{layer}"]
        packed[f"w_ih_p_{layer}"] = jnp.asarray(w_ih.T, jnp.bfloat16)   # (in, 4H)
        packed[f"w_hh_p_{layer}"] = jnp.asarray(w_hh.T, jnp.bfloat16)   # (H, 4H)
        packed[f"b_p_{layer}"] = bias.reshape(1, GATE_DIM).astype(jnp.float32)
    packed["fc_w_p"] = jnp.asarray(raw["fc_w"].T, jnp.bfloat16)         # (H, V)
    packed["fc_b"] = raw["fc_b"].reshape(1, VOCAB_SIZE).astype(jnp.float32)
    return packed


# ----------------------------- pure-JAX reference -----------------------------------
def reference_forward(params, tokens, hidden):
    """Reference with matmul operands cast to bf16 (mirrors kernel precision)."""
    def bdot(a, b):
        return jnp.dot(a.astype(jnp.bfloat16), b.astype(jnp.bfloat16),
                       preferred_element_type=jnp.float32)

    h_all, c_all = hidden
    emb = jnp.take(params["embedding"], tokens, axis=0)        # (B, T, E)
    x = jnp.transpose(emb, (1, 0, 2)).astype(jnp.float32)      # (T, B, E)
    h_list, c_list = [], []
    for layer in range(NUM_LAYERS):
        w_ih_t = params[f"w_ih_{layer}"].T
        w_hh_t = params[f"w_hh_{layer}"].T
        bias = (params[f"b_ih_{layer}"] + params[f"b_hh_{layer}"])[None, :]

        def step(carry, x_t, w_ih_t=w_ih_t, w_hh_t=w_hh_t, bias=bias):
            h, c = carry
            gates = bdot(x_t, w_ih_t) + bias + bdot(h, w_hh_t)
            H = HID_DIM
            i = jax.nn.sigmoid(gates[:, :H])
            f = jax.nn.sigmoid(gates[:, H:2 * H])
            g = jnp.tanh(gates[:, 2 * H:3 * H])
            o = jax.nn.sigmoid(gates[:, 3 * H:])
            c_new = f * c + i * g
            h_new = o * jnp.tanh(c_new)
            return (h_new, c_new), h_new

        (hn, cn), ys = jax.lax.scan(step, (h_all[layer], c_all[layer]), x)
        x = ys
        h_list.append(hn)
        c_list.append(cn)
    T, B = x.shape[0], x.shape[1]
    logits = (bdot(x.reshape(T * B, HID_DIM), params["fc_w"].T)
              .reshape(T, B, VOCAB_SIZE) + params["fc_b"])
    return (jnp.transpose(logits, (1, 0, 2)),
            (jnp.stack(h_list, 0), jnp.stack(c_list, 0)))


# ----------------------------------- main --------------------------------------------
if __name__ == "__main__":
    key = jax.random.PRNGKey(0)
    pkey, tkey = jax.random.split(key)
    raw_params = init_params(pkey)
    packed_params = pack_params(raw_params)

    tokens = jax.random.randint(tkey, (BATCH, SEQ), 0, VOCAB_SIZE, jnp.int32)
    hidden = (jnp.zeros((NUM_LAYERS, BATCH, HID_DIM), jnp.float32),
              jnp.zeros((NUM_LAYERS, BATCH, HID_DIM), jnp.float32))

    fwd = jax.jit(lstm_model_forward)
    logits, (h_n, c_n) = fwd(packed_params, tokens, hidden)
    jax.block_until_ready((logits, h_n, c_n))

    # Silent correctness check against a pure-JAX reference (raw weights,
    # matmuls in matching bf16-input / f32-accumulate precision).
    ref_logits, (ref_h, ref_c) = reference_forward(raw_params, tokens, hidden)
    assert logits.shape == (BATCH, SEQ, VOCAB_SIZE)
    assert h_n.shape == (NUM_LAYERS, BATCH, HID_DIM)
    assert c_n.shape == (NUM_LAYERS, BATCH, HID_DIM)
    assert jnp.allclose(logits, ref_logits, rtol=1e-2, atol=1e-2)
    assert jnp.allclose(h_n, ref_h, rtol=1e-2, atol=1e-2)
    assert jnp.allclose(c_n, ref_c, rtol=1e-2, atol=1e-2)

    print("KERNEL_OK")
</pallas_src>

<mosaic_0001>
module attributes {stable_mosaic.version = 11 : i64} {
  func.func @_fused_lstm_kernel(%arg0: memref<64x32xbf16, #tpu.memory_space<vmem>>, %arg1: memref<32x128xbf16, #tpu.memory_space<vmem>>, %arg2: memref<32x128xbf16, #tpu.memory_space<vmem>>, %arg3: memref<1x128xf32, #tpu.memory_space<vmem>>, %arg4: memref<32x128xbf16, #tpu.memory_space<vmem>>, %arg5: memref<32x128xbf16, #tpu.memory_space<vmem>>, %arg6: memref<1x128xf32, #tpu.memory_space<vmem>>, %arg7: memref<2x8x32xf32, #tpu.memory_space<vmem>>, %arg8: memref<2x8x32xf32, #tpu.memory_space<vmem>>, %arg9: memref<32x128xbf16, #tpu.memory_space<vmem>>, %arg10: memref<1x128xf32, #tpu.memory_space<vmem>>, %arg11: memref<64x128xf32, #tpu.memory_space<vmem>>, %arg12: memref<2x8x32xf32, #tpu.memory_space<vmem>>, %arg13: memref<2x8x32xf32, #tpu.memory_space<vmem>>, %arg14: memref<64x32xf32, #tpu.memory_space<vmem>>, %arg15: memref<64x128xf32, #tpu.memory_space<vmem>>, %arg16: memref<8x32xf32, #tpu.memory_space<vmem>>, %arg17: memref<8x32xf32, #tpu.memory_space<vmem>>) attributes {dimension_semantics = [], scalar_prefetch = 0 : i64, scratch_operands = 4 : i64, tpu.core_type = #tpu.core_type<tc>} {
    %0 = tpu.iota {dimensions = array<i32: 1>} : vector<8x128xi32>
    %c64_i32 = arith.constant 64 : i32
    %1 = vector.broadcast %c64_i32 : i32 to vector<8x128xi32>
    %2 = arith.cmpi sge, %0, %1 : vector<8x128xi32>
    %c96_i32 = arith.constant 96 : i32
    %3 = vector.broadcast %c96_i32 : i32 to vector<8x128xi32>
    %4 = arith.cmpi slt, %0, %3 : vector<8x128xi32>
    %5 = arith.andi %2, %4 : vector<8x128xi1>
    %c0 = arith.constant 0 : index
    %c0_0 = arith.constant 0 : index
    %6 = vector.load %arg0[%c0, %c0_0] : memref<64x32xbf16, #tpu.memory_space<vmem>>, vector<64x32xbf16>
    %c0_1 = arith.constant 0 : index
    %c0_2 = arith.constant 0 : index
    %7 = vector.load %arg1[%c0_1, %c0_2] : memref<32x128xbf16, #tpu.memory_space<vmem>>, vector<32x128xbf16>
    %cst = arith.constant dense<0.000000e+00> : vector<64x128xf32>
    %8 = tpu.matmul %6, %7, %cst {dimension_numbers = #tpu.dot_dimension_numbers<[1], [0], [0], [1], [0, 0, 1, 1], [], []>} : vector<64x32xbf16>, vector<32x128xbf16>, vector<64x128xf32> -> vector<64x128xf32>
    %c0_3 = arith.constant 0 : index
    %c0_4 = arith.constant 0 : index
    %9 = vector.load %arg3[%c0_3, %c0_4] : memref<1x128xf32, #tpu.memory_space<vmem>>, vector<1x128xf32>
    %10 = vector.broadcast %9 : vector<1x128xf32> to vector<64x128xf32>
    %11 = arith.addf %8, %10 : vector<64x128xf32>
    %c0_5 = arith.constant 0 : index
    %c0_6 = arith.constant 0 : index
    %12 = vector.load %arg15[%c0_5, %c0_6] : memref<64x128xf32, #tpu.memory_space<vmem>>, vector<64x128xf32>
    tpu.vector_store %arg15[%c0_5, %c0_6], %11 {strides = array<i32>} : memref<64x128xf32, #tpu.memory_space<vmem>>, vector<64x128xf32>,
    %c0_7 = arith.constant 0 : index
    %c0_8 = arith.constant 0 : index
    %c0_9 = arith.constant 0 : index
    %13 = vector.load %arg7[%c0_7, %c0_8, %c0_9] : memref<2x8x32xf32, #tpu.memory_space<vmem>>, vector<1x8x32xf32>
    %14 = vector.shape_cast %13 : vector<1x8x32xf32> to vector<8x32xf32>
    %c0_10 = arith.constant 0 : index
    %c0_11 = arith.constant 0 : index
    %15 = vector.load %arg16[%c0_10, %c0_11] : memref<8x32xf32, #tpu.memory_space<vmem>>, vector<8x32xf32>
    tpu.vector_store %arg16[%c0_10, %c0_11], %14 {strides = array<i32>} : memref<8x32xf32, #tpu.memory_space<vmem>>, vector<8x32xf32>,
    %c0_12 = arith.constant 0 : index
    %c0_13 = arith.constant 0 : index
    %c0_14 = arith.constant 0 : index
    %16 = vector.load %arg8[%c0_12, %c0_13, %c0_14] : memref<2x8x32xf32, #tpu.memory_space<vmem>>, vector<1x8x32xf32>
    %17 = vector.shape_cast %16 : vector<1x8x32xf32> to vector<8x32xf32>
    %c0_15 = arith.constant 0 : index
    %c0_16 = arith.constant 0 : index
    %18 = vector.load %arg17[%c0_15, %c0_16] : memref<8x32xf32, #tpu.memory_space<vmem>>, vector<8x32xf32>
    tpu.vector_store %arg17[%c0_15, %c0_16], %17 {strides = array<i32>} : memref<8x32xf32, #tpu.memory_space<vmem>>, vector<8x32xf32>,
    %c0_17 = arith.constant 0 : index
    %c0_18 = arith.constant 0 : index
    %19 = vector.load %arg15[%c0_17, %c0_18] : memref<64x128xf32, #tpu.memory_space<vmem>>, vector<8x128xf32>
    %c0_19 = arith.constant 0 : index
    %c0_20 = arith.constant 0 : index
    %20 = vector.load %arg16[%c0_19, %c0_20] : memref<8x32xf32, #tpu.memory_space<vmem>>, vector<8x32xf32>
    %21 = arith.truncf %20 : vector<8x32xf32> to vector<8x32xbf16>
    %c0_21 = arith.constant 0 : index
    %c0_22 = arith.constant 0 : index
    %22 = vector.load %arg2[%c0_21, %c0_22] : memref<32x128xbf16, #tpu.memory_space<vmem>>, vector<32x128xbf16>
    %cst_23 = arith.constant dense<0.000000e+00> : vector<8x128xf32>
    %23 = tpu.matmul %21, %22, %cst_23 {dimension_numbers = #tpu.dot_dimension_numbers<[1], [0], [0], [1], [0, 0, 1, 1], [], []>} : vector<8x32xbf16>, vector<32x128xbf16>, vector<8x128xf32> -> vector<8x128xf32>
    %24 = arith.addf %19, %23 : vector<8x128xf32>
    %25 = math.tanh %24 : vector<8x128xf32>
    %26 = arith.negf %24 : vector<8x128xf32>
    %27 = math.exp %26 : vector<8x128xf32>
    %cst_24 = arith.constant 1.000000e+00 : f32
    %28 = vector.broadcast %cst_24 : f32 to vector<8x128xf32>
    %29 = arith.addf %28, %27 : vector<8x128xf32>
    %30 = arith.divf %28, %29 : vector<8x128xf32>
    %31 = arith.select %5, %25, %30 : vector<8x128xi1>, vector<8x128xf32>
    %32 = vector.extract_strided_slice %31 {offsets = [0, 0], sizes = [8, 32], strides = [1, 1]} : vector<8x128xf32> to vector<8x32xf32>
    %33 = vector.extract_strided_slice %31 {offsets = [0, 32], sizes = [8, 32], strides = [1, 1]} : vector<8x128xf32> to vector<8x32xf32>
    %34 = vector.extract_strided_slice %31 {offsets = [0, 64], sizes = [8, 32], strides = [1, 1]} : vector<8x128xf32> to vector<8x32xf32>
    %35 = vector.extract_strided_slice %31 {offsets = [0, 96], sizes = [8, 32], strides = [1, 1]} : vector<8x128xf32> to vector<8x32xf32>
    %c0_25 = arith.constant 0 : index
    %c0_26 = arith.constant 0 : index
    %36 = vector.load %arg17[%c0_25, %c0_26] : memref<8x32xf32, #tpu.memory_space<vmem>>, vector<8x32xf32>
    %37 = arith.mulf %33, %36 : vector<8x32xf32>
    %38 = arith.mulf %32, %34 : vector<8x32xf32>
    %39 = arith.addf %37, %38 : vector<8x32xf32>
    %40 = math.tanh %39 : vector<8x32xf32>
    %41 = arith.mulf %35, %40 : vector<8x32xf32>
    %c0_27 = arith.constant 0 : index
    %c0_28 = arith.constant 0 : index
    %42 = vector.load %arg17[%c0_27, %c0_28] : memref<8x32xf32, #tpu.memory_space<vmem>>, vector<8x32xf32>
    tpu.vector_store %arg17[%c0_27, %c0_28], %39 {strides = array<i32>} : memref<8x32xf32, #tpu.memory_space<vmem>>, vector<8x32xf32>,
    %c0_29 = arith.constant 0 : index
    %c0_30 = arith.constant 0 : index
    %43 = vector.load %arg16[%c0_29, %c0_30] : memref<8x32xf32, #tpu.memory_space<vmem>>, vector<8x32xf32>
    tpu.vector_store %arg16[%c0_29, %c0_30], %41 {strides = array<i32>} : memref<8x32xf32, #tpu.memory_space<vmem>>, vector<8x32xf32>,
    %c0_31 = arith.constant 0 : index
    %c0_32 = arith.constant 0 : index
    %44 = vector.load %arg14[%c0_31, %c0_32] : memref<64x32xf32, #tpu.memory_space<vmem>>, vector<8x32xf32>
    tpu.vector_store %arg14[%c0_31, %c0_32], %41 {strides = array<i32>} : memref<64x32xf32, #tpu.memory_space<vmem>>, vector<8x32xf32>,
    %c8 = arith.constant 8 : index
    %c0_33 = arith.constant 0 : index
    %45 = vector.load %arg15[%c8, %c0_33] : memref<64x128xf32, #tpu.memory_space<vmem>>, vector<8x128xf32>
    %c0_34 = arith.constant 0 : index
    %c0_35 = arith.constant 0 : index
    %46 = vector.load %arg16[%c0_34, %c0_35] : memref<8x32xf32, #tpu.memory_space<vmem>>, vector<8x32xf32>
    %47 = arith.truncf %46 : vector<8x32xf32> to vector<8x32xbf16>
    %c0_36 = arith.constant 0 : index
    %c0_37 = arith.constant 0 : index
    %48 = vector.load %arg2[%c0_36, %c0_37] : memref<32x128xbf16, #tpu.memory_space<vmem>>, vector<32x128xbf16>
    %cst_38 = arith.constant dense<0.000000e+00> : vector<8x128xf32>
    %49 = tpu.matmul %47, %48, %cst_38 {dimension_numbers = #tpu.dot_dimension_numbers<[1], [0], [0], [1], [0, 0, 1, 1], [], []>} : vector<8x32xbf16>, vector<32x128xbf16>, vector<8x128xf32> -> vector<8x128xf32>
    %50 = arith.addf %45, %49 : vector<8x128xf32>
    %51 = math.tanh %50 : vector<8x128xf32>
    %52 = arith.negf %50 : vector<8x128xf32>
    %53 = math.exp %52 : vector<8x128xf32>
    %cst_39 = arith.constant 1.000000e+00 : f32
    %54 = vector.broadcast %cst_39 : f32 to vector<8x128xf32>
    %55 = arith.addf %54, %53 : vector<8x128xf32>
    %56 = arith.divf %54, %55 : vector<8x128xf32>
    %57 = arith.select %5, %51, %56 : vector<8x128xi1>, vector<8x128xf32>
    %58 = vector.extract_strided_slice %57 {offsets = [0, 0], sizes = [8, 32], strides = [1, 1]} : vector<8x128xf32> to vector<8x32xf32>
    %59 = vector.extract_strided_slice %57 {offsets = [0, 32], sizes = [8, 32], strides = [1, 1]} : vector<8x128xf32> to vector<8x32xf32>
    %60 = vector.extract_strided_slice %57 {offsets = [0, 64], sizes = [8, 32], strides = [1, 1]} : vector<8x128xf32> to vector<8x32xf32>
    %61 = vector.extract_strided_slice %57 {offsets = [0, 96], sizes = [8, 32], strides = [1, 1]} : vector<8x128xf32> to vector<8x32xf32>
    %c0_40 = arith.constant 0 : index
    %c0_41 = arith.constant 0 : index
    %62 = vector.load %arg17[%c0_40, %c0_41] : memref<8x32xf32, #tpu.memory_space<vmem>>, vector<8x32xf32>
    %63 = arith.mulf %59, %62 : vector<8x32xf32>
    %64 = arith.mulf %58, %60 : vector<8x32xf32>
    %65 = arith.addf %63, %64 : vector<8x32xf32>
    %66 = math.tanh %65 : vector<8x32xf32>
    %67 = arith.mulf %61, %66 : vector<8x32xf32>
    %c0_42 = arith.constant 0 : index
    %c0_43 = arith.constant 0 : index
    %68 = vector.load %arg17[%c0_42, %c0_43] : memref<8x32xf32, #tpu.memory_space<vmem>>, vector<8x32xf32>
    tpu.vector_store %arg17[%c0_42, %c0_43], %65 {strides = array<i32>} : memref<8x32xf32, #tpu.memory_space<vmem>>, vector<8x32xf32>,
    %c0_44 = arith.constant 0 : index
    %c0_45 = arith.constant 0 : index
    %69 = vector.load %arg16[%c0_44, %c0_45] : memref<8x32xf32, #tpu.memory_space<vmem>>, vector<8x32xf32>
    tpu.vector_store %arg16[%c0_44, %c0_45], %67 {strides = array<i32>} : memref<8x32xf32, #tpu.memory_space<vmem>>, vector<8x32xf32>,
    %c8_46 = arith.constant 8 : index
    %c0_47 = arith.constant 0 : index
    %70 = vector.load %arg14[%c8_46, %c0_47] : memref<64x32xf32, #tpu.memory_space<vmem>>, vector<8x32xf32>
    tpu.vector_store %arg14[%c8_46, %c0_47], %67 {strides = array<i32>} : memref<64x32xf32, #tpu.memory_space<vmem>>, vector<8x32xf32>,
    %c16 = arith.constant 16 : index
    %c0_48 = arith.constant 0 : index
    %71 = vector.load %arg15[%c16, %c0_48] : memref<64x128xf32, #tpu.memory_space<vmem>>, vector<8x128xf32>
    %c0_49 = arith.constant 0 : index
    %c0_50 = arith.constant 0 : index
    %72 = vector.load %arg16[%c0_49, %c0_50] : memref<8x32xf32, #tpu.memory_space<vmem>>, vector<8x32xf32>
    %73 = arith.truncf %72 : vector<8x32xf32> to vector<8x32xbf16>
    %c0_51 = arith.constant 0 : index
    %c0_52 = arith.constant 0 : index
    %74 = vector.load %arg2[%c0_51, %c0_52] : memref<32x128xbf16, #tpu.memory_space<vmem>>, vector<32x128xbf16>
    %cst_53 = arith.constant dense<0.000000e+00> : vector<8x128xf32>
    %75 = tpu.matmul %73, %74, %cst_53 {dimension_numbers = #tpu.dot_dimension_numbers<[1], [0], [0], [1], [0, 0, 1, 1], [], []>} : vector<8x32xbf16>, vector<32x128xbf16>, vector<8x128xf32> -> vector<8x128xf32>
    %76 = arith.addf %71, %75 : vector<8x128xf32>
    %77 = math.tanh %76 : vector<8x128xf32>
    %78 = arith.negf %76 : vector<8x128xf32>
    %79 = math.exp %78 : vector<8x128xf32>
    %cst_54 = arith.constant 1.000000e+00 : f32
    %80 = vector.broadcast %cst_54 : f32 to vector<8x128xf32>
    %81 = arith.addf %80, %79 : vector<8x128xf32>
    %82 = arith.divf %80, %81 : vector<8x128xf32>
    %83 = arith.select %5, %77, %82 : vector<8x128xi1>, vector<8x128xf32>
    %84 = vector.extract_strided_slice %83 {offsets = [0, 0], sizes = [8, 32], strides = [1, 1]} : vector<8x128xf32> to vector<8x32xf32>
    %85 = vector.extract_strided_slice %83 {offsets = [0, 32], sizes = [8, 32], strides = [1, 1]} : vector<8x128xf32> to vector<8x32xf32>
    %86 = vector.extract_strided_slice %83 {offsets = [0, 64], sizes = [8, 32], strides = [1, 1]} : vector<8x128xf32> to vector<8x32xf32>
    %87 = vector.extract_strided_slice %83 {offsets = [0, 96], sizes = [8, 32], strides = [1, 1]} : vector<8x128xf32> to vector<8x32xf32>
    %c0_55 = arith.constant 0 : index
    %c0_56 = arith.constant 0 : index
    %88 = vector.load %arg17[%c0_55, %c0_56] : memref<8x32xf32, #tpu.memory_space<vmem>>, vector<8x32xf32>
    %89 = arith.mulf %85, %88 : vector<8x32xf32>
    %90 = arith.mulf %84, %86 : vector<8x32xf32>
    %91 = arith.addf %89, %90 : vector<8x32xf32>
    %92 = math.tanh %91 : vector<8x32xf32>
    %93 = arith.mulf %87, %92 : vector<8x32xf32>
    %c0_57 = arith.constant 0 : index
    %c0_58 = arith.constant 0 : index
    %94 = vector.load %arg17[%c0_57, %c0_58] : memref<8x32xf32, #tpu.memory_space<vmem>>, vector<8x32xf32>
    tpu.vector_store %arg17[%c0_57, %c0_58], %91 {strides = array<i32>} : memref<8x32xf32, #tpu.memory_space<vmem>>, vector<8x32xf32>,
    %c0_59 = arith.constant 0 : index
    %c0_60 = arith.constant 0 : index
    %95 = vector.load %arg16[%c0_59, %c0_60] : memref<8x32xf32, #tpu.memory_space<vmem>>, vector<8x32xf32>
    tpu.vector_store %arg16[%c0_59, %c0_60], %93 {strides = array<i32>} : memref<8x32xf32, #tpu.memory_space<vmem>>, vector<8x32xf32>,
    %c16_61 = arith.constant 16 : index
    %c0_62 = arith.constant 0 : index
    %96 = vector.load %arg14[%c16_61, %c0_62] : memref<64x32xf32, #tpu.memory_space<vmem>>, vector<8x32xf32>
    tpu.vector_store %arg14[%c16_61, %c0_62], %93 {strides = array<i32>} : memref<64x32xf32, #tpu.memory_space<vmem>>, vector<8x32xf32>,
    %c24 = arith.constant 24 : index
    %c0_63 = arith.constant 0 : index
    %97 = vector.load %arg15[%c24, %c0_63] : memref<64x128xf32, #tpu.memory_space<vmem>>, vector<8x128xf32>
    %c0_64 = arith.constant 0 : index
    %c0_65 = arith.constant 0 : index
    %98 = vector.load %arg16[%c0_64, %c0_65] : memref<8x32xf32, #tpu.memory_space<vmem>>, vector<8x32xf32>
    %99 = arith.truncf %98 : vector<8x32xf32> to vector<8x32xbf16>
    %c0_66 = arith.constant 0 : index
    %c0_67 = arith.constant 0 : index
    %100 = vector.load %arg2[%c0_66, %c0_67] : memref<32x128xbf16, #tpu.memory_space<vmem>>, vector<32x128xbf16>
    %cst_68 = arith.constant dense<0.000000e+00> : vector<8x128xf32>
    %101 = tpu.matmul %99, %100, %cst_68 {dimension_numbers = #tpu.dot_dimension_numbers<[1], [0], [0], [1], [0, 0, 1, 1], [], []>} : vector<8x32xbf16>, vector<32x128xbf16>, vector<8x128xf32> -> vector<8x128xf32>
    %102 = arith.addf %97, %101 : vector<8x128xf32>
    %103 = math.tanh %102 : vector<8x128xf32>
    %104 = arith.negf %102 : vector<8x128xf32>
    %105 = math.exp %104 : vector<8x128xf32>
    %cst_69 = arith.constant 1.000000e+00 : f32
    %106 = vector.broadcast %cst_69 : f32 to vector<8x128xf32>
    %107 = arith.addf %106, %105 : vector<8x128xf32>
    %108 = arith.divf %106, %107 : vector<8x128xf32>
    %109 = arith.select %5, %103, %108 : vector<8x128xi1>, vector<8x128xf32>
    %110 = vector.extract_strided_slice %109 {offsets = [0, 0], sizes = [8, 32], strides = [1, 1]} : vector<8x128xf32> to vector<8x32xf32>
    %111 = vector.extract_strided_slice %109 {offsets = [0, 32], sizes = [8, 32], strides = [1, 1]} : vector<8x128xf32> to vector<8x32xf32>
    %112 = vector.extract_strided_slice %109 {offsets = [0, 64], sizes = [8, 32], strides = [1, 1]} : vector<8x128xf32> to vector<8x32xf32>
    %113 = vector.extract_strided_slice %109 {offsets = [0, 96], sizes = [8, 32], strides = [1, 1]} : vector<8x128xf32> to vector<8x32xf32>
    %c0_70 = arith.constant 0 : index
    %c0_71 = arith.constant 0 : index
    %114 = vector.load %arg17[%c0_70, %c0_71] : memref<8x32xf32, #tpu.memory_space<vmem>>, vector<8x32xf32>
    %115 = arith.mulf %111, %114 : vector<8x32xf32>
    %116 = arith.mulf %110, %112 : vector<8x32xf32>
    %117 = arith.addf %115, %116 : vector<8x32xf32>
    %118 = math.tanh %117 : vector<8x32xf32>
    %119 = arith.mulf %113, %118 : vector<8x32xf32>
    %c0_72 = arith.constant 0 : index
    %c0_73 = arith.constant 0 : index
    %120 = vector.load %arg17[%c0_72, %c0_73] : memref<8x32xf32, #tpu.memory_space<vmem>>, vector<8x32xf32>
    tpu.vector_store %arg17[%c0_72, %c0_73], %117 {strides = array<i32>} : memref<8x32xf32, #tpu.memory_space<vmem>>, vector<8x32xf32>,
    %c0_74 = arith.constant 0 : index
    %c0_75 = arith.constant 0 : index
    %121 = vector.load %arg16[%c0_74, %c0_75] : memref<8x32xf32, #tpu.memory_space<vmem>>, vector<8x32xf32>
    tpu.vector_store %arg16[%c0_74, %c0_75], %119 {strides = array<i32>} : memref<8x32xf32, #tpu.memory_space<vmem>>, vector<8x32xf32>,
    %c24_76 = arith.constant 24 : index
    %c0_77 = arith.constant 0 : index
    %122 = vector.load %arg14[%c24_76, %c0_77] : memref<64x32xf32, #tpu.memory_space<vmem>>, vector<8x32xf32>
    tpu.vector_store %arg14[%c24_76, %c0_77], %119 {strides = array<i32>} : memref<64x32xf32, #tpu.memory_space<vmem>>, vector<8x32xf32>,
    %c32 = arith.constant 32 : index
    %c0_78 = arith.constant 0 : index
    %123 = vector.load %arg15[%c32, %c0_78] : memref<64x128xf32, #tpu.memory_space<vmem>>, vector<8x128xf32>
    %c0_79 = arith.constant 0 : index
    %c0_80 = arith.constant 0 : index
    %124 = vector.load %arg16[%c0_79, %c0_80] : memref<8x32xf32, #tpu.memory_space<vmem>>, vector<8x32xf32>
    %125 = arith.truncf %124 : vector<8x32xf32> to vector<8x32xbf16>
    %c0_81 = arith.constant 0 : index
    %c0_82 = arith.constant 0 : index
    %126 = vector.load %arg2[%c0_81, %c0_82] : memref<32x128xbf16, #tpu.memory_space<vmem>>, vector<32x128xbf16>
    %cst_83 = arith.constant dense<0.000000e+00> : vector<8x128xf32>
    %127 = tpu.matmul %125, %126, %cst_83 {dimension_numbers = #tpu.dot_dimension_numbers<[1], [0], [0], [1], [0, 0, 1, 1], [], []>} : vector<8x32xbf16>, vector<32x128xbf16>, vector<8x128xf32> -> vector<8x128xf32>
    %128 = arith.addf %123, %127 : vector<8x128xf32>
    %129 = math.tanh %128 : vector<8x128xf32>
    %130 = arith.negf %128 : vector<8x128xf32>
    %131 = math.exp %130 : vector<8x128xf32>
    %cst_84 = arith.constant 1.000000e+00 : f32
    %132 = vector.broadcast %cst_84 : f32 to vector<8x128xf32>
    %133 = arith.addf %132, %131 : vector<8x128xf32>
    %134 = arith.divf %132, %133 : vector<8x128xf32>
    %135 = arith.select %5, %129, %134 : vector<8x128xi1>, vector<8x128xf32>
    %136 = vector.extract_strided_slice %135 {offsets = [0, 0], sizes = [8, 32], strides = [1, 1]} : vector<8x128xf32> to vector<8x32xf32>
    %137 = vector.extract_strided_slice %135 {offsets = [0, 32], sizes = [8, 32], strides = [1, 1]} : vector<8x128xf32> to vector<8x32xf32>
    %138 = vector.extract_strided_slice %135 {offsets = [0, 64], sizes = [8, 32], strides = [1, 1]} : vector<8x128xf32> to vector<8x32xf32>
    %139 = vector.extract_strided_slice %135 {offsets = [0, 96], sizes = [8, 32], strides = [1, 1]} : vector<8x128xf32> to vector<8x32xf32>
    %c0_85 = arith.constant 0 : index
    %c0_86 = arith.constant 0 : index
    %140 = vector.load %arg17[%c0_85, %c0_86] : memref<8x32xf32, #tpu.memory_space<vmem>>, vector<8x32xf32>
    %141 = arith.mulf %137, %140 : vector<8x32xf32>
    %142 = arith.mulf %136, %138 : vector<8x32xf32>
    %143 = arith.addf %141, %142 : vector<8x32xf32>
    %144 = math.tanh %143 : vector<8x32xf32>
    %145 = arith.mulf %139, %144 : vector<8x32xf32>
    %c0_87 = arith.constant 0 : index
    %c0_88 = arith.constant 0 : index
    %146 = vector.load %arg17[%c0_87, %c0_88] : memref<8x32xf32, #tpu.memory_space<vmem>>, vector<8x32xf32>
    tpu.vector_store %arg17[%c0_87, %c0_88], %143 {strides = array<i32>} : memref<8x32xf32, #tpu.memory_space<vmem>>, vector<8x32xf32>,
    %c0_89 = arith.constant 0 : index
    %c0_90 = arith.constant 0 : index
    %147 = vector.load %arg16[%c0_89, %c0_90] : memref<8x32xf32, #tpu.memory_space<vmem>>, vector<8x32xf32>
    tpu.vector_store %arg16[%c0_89, %c0_90], %145 {strides = array<i32>} : memref<8x32xf32, #tpu.memory_space<vmem>>, vector<8x32xf32>,
    %c32_91 = arith.constant 32 : index
    %c0_92 = arith.constant 0 : index
    %148 = vector.load %arg14[%c32_91, %c0_92] : memref<64x32xf32, #tpu.memory_space<vmem>>, vector<8x32xf32>
    tpu.vector_store %arg14[%c32_91, %c0_92], %145 {strides = array<i32>} : memref<64x32xf32, #tpu.memory_space<vmem>>, vector<8x32xf32>,
    %c40 = arith.constant 40 : index
    %c0_93 = arith.constant 0 : index
    %149 = vector.load %arg15[%c40, %c0_93] : memref<64x128xf32, #tpu.memory_space<vmem>>, vector<8x128xf32>
    %c0_94 = arith.constant 0 : index
    %c0_95 = arith.constant 0 : index
    %150 = vector.load %arg16[%c0_94, %c0_95] : memref<8x32xf32, #tpu.memory_space<vmem>>, vector<8x32xf32>
    %151 = arith.truncf %150 : vector<8x32xf32> to vector<8x32xbf16>
    %c0_96 = arith.constant 0 : index
    %c0_97 = arith.constant 0 : index
    %152 = vector.load %arg2[%c0_96, %c0_97] : memref<32x128xbf16, #tpu.memory_space<vmem>>, vector<32x128xbf16>
    %cst_98 = arith.constant dense<0.000000e+00> : vector<8x128xf32>
    %153 = tpu.matmul %151, %152, %cst_98 {dimension_numbers = #tpu.dot_dimension_numbers<[1], [0], [0], [1], [0, 0, 1, 1], [], []>} : vector<8x32xbf16>, vector<32x128xbf16>, vector<8x128xf32> -> vector<8x128xf32>
    %154 = arith.addf %149, %153 : vector<8x128xf32>
    %155 = math.tanh %154 : vector<8x128xf32>
    %156 = arith.negf %154 : vector<8x128xf32>
    %157 = math.exp %156 : vector<8x128xf32>
    %cst_99 = arith.constant 1.000000e+00 : f32
    %158 = vector.broadcast %cst_99 : f32 to vector<8x128xf32>
    %159 = arith.addf %158, %157 : vector<8x128xf32>
    %160 = arith.divf %158, %159 : vector<8x128xf32>
    %161 = arith.select %5, %155, %160 : vector<8x128xi1>, vector<8x128xf32>
    %162 = vector.extract_strided_slice %161 {offsets = [0, 0], sizes = [8, 32], strides = [1, 1]} : vector<8x128xf32> to vector<8x32xf32>
    %163 = vector.extract_strided_slice %161 {offsets = [0, 32], sizes = [8, 32], strides = [1, 1]} : vector<8x128xf32> to vector<8x32xf32>
    %164 = vector.extract_strided_slice %161 {offsets = [0, 64], sizes = [8, 32], strides = [1, 1]} : vector<8x128xf32> to vector<8x32xf32>
    %165 = vector.extract_strided_slice %161 {offsets = [0, 96], sizes = [8, 32], strides = [1, 1]} : vector<8x128xf32> to vector<8x32xf32>
    %c0_100 = arith.constant 0 : index
    %c0_101 = arith.constant 0 : index
    %166 = vector.load %arg17[%c0_100, %c0_101] : memref<8x32xf32, #tpu.memory_space<vmem>>, vector<8x32xf32>
    %167 = arith.mulf %163, %166 : vector<8x32xf32>
    %168 = arith.mulf %162, %164 : vector<8x32xf32>
    %169 = arith.addf %167, %168 : vector<8x32xf32>
    %170 = math.tanh %169 : vector<8x32xf32>
    %171 = arith.mulf %165, %170 : vector<8x32xf32>
    %c0_102 = arith.constant 0 : index
    %c0_103 = arith.constant 0 : index
    %172 = vector.load %arg17[%c0_102, %c0_103] : memref<8x32xf32, #tpu.memory_space<vmem>>, vector<8x32xf32>
    tpu.vector_store %arg17[%c0_102, %c0_103], %169 {strides = array<i32>} : memref<8x32xf32, #tpu.memory_space<vmem>>, vector<8x32xf32>,
    %c0_104 = arith.constant 0 : index
    %c0_105 = arith.constant 0 : index
    %173 = vector.load %arg16[%c0_104, %c0_105] : memref<8x32xf32, #tpu.memory_space<vmem>>, vector<8x32xf32>
    tpu.vector_store %arg16[%c0_104, %c0_105], %171 {strides = array<i32>} : memref<8x32xf32, #tpu.memory_space<vmem>>, vector<8x32xf32>,
    %c40_106 = arith.constant 40 : index
    %c0_107 = arith.constant 0 : index
    %174 = vector.load %arg14[%c40_106, %c0_107] : memref<64x32xf32, #tpu.memory_space<vmem>>, vector<8x32xf32>
    tpu.vector_store %arg14[%c40_106, %c0_107], %171 {strides = array<i32>} : memref<64x32xf32, #tpu.memory_space<vmem>>, vector<8x32xf32>,
    %c48 = arith.constant 48 : index
    %c0_108 = arith.constant 0 : index
    %175 = vector.load %arg15[%c48, %c0_108] : memref<64x128xf32, #tpu.memory_space<vmem>>, vector<8x128xf32>
    %c0_109 = arith.constant 0 : index
    %c0_110 = arith.constant 0 : index
    %176 = vector.load %arg16[%c0_109, %c0_110] : memref<8x32xf32, #tpu.memory_space<vmem>>, vector<8x32xf32>
    %177 = arith.truncf %176 : vector<8x32xf32> to vector<8x32xbf16>
    %c0_111 = arith.constant 0 : index
    %c0_112 = arith.constant 0 : index
    %178 = vector.load %arg2[%c0_111, %c0_112] : memref<32x128xbf16, #tpu.memory_space<vmem>>, vector<32x128xbf16>
    %cst_113 = arith.constant dense<0.000000e+00> : vector<8x128xf32>
    %179 = tpu.matmul %177, %178, %cst_113 {dimension_numbers = #tpu.dot_dimension_numbers<[1], [0], [0], [1], [0, 0, 1, 1], [], []>} : vector<8x32xbf16>, vector<32x128xbf16>, vector<8x128xf32> -> vector<8x128xf32>
    %180 = arith.addf %175, %179 : vector<8x128xf32>
    %181 = math.tanh %180 : vector<8x128xf32>
    %182 = arith.negf %180 : vector<8x128xf32>
    %183 = math.exp %182 : vector<8x128xf32>
    %cst_114 = arith.constant 1.000000e+00 : f32
    %184 = vector.broadcast %cst_114 : f32 to vector<8x128xf32>
    %185 = arith.addf %184, %183 : vector<8x128xf32>
    %186 = arith.divf %184, %185 : vector<8x128xf32>
    %187 = arith.select %5, %181, %186 : vector<8x128xi1>, vector<8x128xf32>
    %188 = vector.extract_strided_slice %187 {offsets = [0, 0], sizes = [8, 32], strides = [1, 1]} : vector<8x128xf32> to vector<8x32xf32>
    %189 = vector.extract_strided_slice %187 {offsets = [0, 32], sizes = [8, 32], strides = [1, 1]} : vector<8x128xf32> to vector<8x32xf32>
    %190 = vector.extract_strided_slice %187 {offsets = [0, 64], sizes = [8, 32], strides = [1, 1]} : vector<8x128xf32> to vector<8x32xf32>
    %191 = vector.extract_strided_slice %187 {offsets = [0, 96], sizes = [8, 32], strides = [1, 1]} : vector<8x128xf32> to vector<8x32xf32>
    %c0_115 = arith.constant 0 : index
    %c0_116 = arith.constant 0 : index
    %192 = vector.load %arg17[%c0_115, %c0_116] : memref<8x32xf32, #tpu.memory_space<vmem>>, vector<8x32xf32>
    %193 = arith.mulf %189, %192 : vector<8x32xf32>
    %194 = arith.mulf %188, %190 : vector<8x32xf32>
    %195 = arith.addf %193, %194 : vector<8x32xf32>
    %196 = math.tanh %195 : vector<8x32xf32>
    %197 = arith.mulf %191, %196 : vector<8x32xf32>
    %c0_117 = arith.constant 0 : index
    %c0_118 = arith.constant 0 : index
    %198 = vector.load %arg17[%c0_117, %c0_118] : memref<8x32xf32, #tpu.memory_space<vmem>>, vector<8x32xf32>
    tpu.vector_store %arg17[%c0_117, %c0_118], %195 {strides = array<i32>} : memref<8x32xf32, #tpu.memory_space<vmem>>, vector<8x32xf32>,
    %c0_119 = arith.constant 0 : index
    %c0_120 = arith.constant 0 : index
    %199 = vector.load %arg16[%c0_119, %c0_120] : memref<8x32xf32, #tpu.memory_space<vmem>>, vector<8x32xf32>
    tpu.vector_store %arg16[%c0_119, %c0_120], %197 {strides = array<i32>} : memref<8x32xf32, #tpu.memory_space<vmem>>, vector<8x32xf32>,
    %c48_121 = arith.constant 48 : index
    %c0_122 = arith.constant 0 : index
    %200 = vector.load %arg14[%c48_121, %c0_122] : memref<64x32xf32, #tpu.memory_space<vmem>>, vector<8x32xf32>
    tpu.vector_store %arg14[%c48_121, %c0_122], %197 {strides = array<i32>} : memref<64x32xf32, #tpu.memory_space<vmem>>, vector<8x32xf32>,
    %c56 = arith.constant 56 : index
    %c0_123 = arith.constant 0 : index
    %201 = vector.load %arg15[%c56, %c0_123] : memref<64x128xf32, #tpu.memory_space<vmem>>, vector<8x128xf32>
    %c0_124 = arith.constant 0 : index
    %c0_125 = arith.constant 0 : index
    %202 = vector.load %arg16[%c0_124, %c0_125] : memref<8x32xf32, #tpu.memory_space<vmem>>, vector<8x32xf32>
    %203 = arith.truncf %202 : vector<8x32xf32> to vector<8x32xbf16>
    %c0_126 = arith.constant 0 : index
    %c0_127 = arith.constant 0 : index
    %204 = vector.load %arg2[%c0_126, %c0_127] : memref<32x128xbf16, #tpu.memory_space<vmem>>, vector<32x128xbf16>
    %cst_128 = arith.constant dense<0.000000e+00> : vector<8x128xf32>
    %205 = tpu.matmul %203, %204, %cst_128 {dimension_numbers = #tpu.dot_dimension_numbers<[1], [0], [0], [1], [0, 0, 1, 1], [], []>} : vector<8x32xbf16>, vector<32x128xbf16>, vector<8x128xf32> -> vector<8x128xf32>
    %206 = arith.addf %201, %205 : vector<8x128xf32>
    %207 = math.tanh %206 : vector<8x128xf32>
    %208 = arith.negf %206 : vector<8x128xf32>
    %209 = math.exp %208 : vector<8x128xf32>
    %cst_129 = arith.constant 1.000000e+00 : f32
    %210 = vector.broadcast %cst_129 : f32 to vector<8x128xf32>
    %211 = arith.addf %210, %209 : vector<8x128xf32>
    %212 = arith.divf %210, %211 : vector<8x128xf32>
    %213 = arith.select %5, %207, %212 : vector<8x128xi1>, vector<8x128xf32>
    %214 = vector.extract_strided_slice %213 {offsets = [0, 0], sizes = [8, 32], strides = [1, 1]} : vector<8x128xf32> to vector<8x32xf32>
    %215 = vector.extract_strided_slice %213 {offsets = [0, 32], sizes = [8, 32], strides = [1, 1]} : vector<8x128xf32> to vector<8x32xf32>
    %216 = vector.extract_strided_slice %213 {offsets = [0, 64], sizes = [8, 32], strides = [1, 1]} : vector<8x128xf32> to vector<8x32xf32>
    %217 = vector.extract_strided_slice %213 {offsets = [0, 96], sizes = [8, 32], strides = [1, 1]} : vector<8x128xf32> to vector<8x32xf32>
    %c0_130 = arith.constant 0 : index
    %c0_131 = arith.constant 0 : index
    %218 = vector.load %arg17[%c0_130, %c0_131] : memref<8x32xf32, #tpu.memory_space<vmem>>, vector<8x32xf32>
    %219 = arith.mulf %215, %218 : vector<8x32xf32>
    %220 = arith.mulf %214, %216 : vector<8x32xf32>
    %221 = arith.addf %219, %220 : vector<8x32xf32>
    %222 = math.tanh %221 : vector<8x32xf32>
    %223 = arith.mulf %217, %222 : vector<8x32xf32>
    %c0_132 = arith.constant 0 : index
    %c0_133 = arith.constant 0 : index
    %224 = vector.load %arg17[%c0_132, %c0_133] : memref<8x32xf32, #tpu.memory_space<vmem>>, vector<8x32xf32>
    tpu.vector_store %arg17[%c0_132, %c0_133], %221 {strides = array<i32>} : memref<8x32xf32, #tpu.memory_space<vmem>>, vector<8x32xf32>,
    %c0_134 = arith.constant 0 : index
    %c0_135 = arith.constant 0 : index
    %225 = vector.load %arg16[%c0_134, %c0_135] : memref<8x32xf32, #tpu.memory_space<vmem>>, vector<8x32xf32>
    tpu.vector_store %arg16[%c0_134, %c0_135], %223 {strides = array<i32>} : memref<8x32xf32, #tpu.memory_space<vmem>>, vector<8x32xf32>,
    %c56_136 = arith.constant 56 : index
    %c0_137 = arith.constant 0 : index
    %226 = vector.load %arg14[%c56_136, %c0_137] : memref<64x32xf32, #tpu.memory_space<vmem>>, vector<8x32xf32>
    tpu.vector_store %arg14[%c56_136, %c0_137], %223 {strides = array<i32>} : memref<64x32xf32, #tpu.memory_space<vmem>>, vector<8x32xf32>,
    %c0_138 = arith.constant 0 : index
    %c0_139 = arith.constant 0 : index
    %227 = vector.load %arg16[%c0_138, %c0_139] : memref<8x32xf32, #tpu.memory_space<vmem>>, vector<8x32xf32>
    %c0_140 = arith.constant 0 : index
    %c0_141 = arith.constant 0 : index
    %c0_142 = arith.constant 0 : index
    %228 = vector.load %arg12[%c0_140, %c0_141, %c0_142] : memref<2x8x32xf32, #tpu.memory_space<vmem>>, vector<1x8x32xf32>
    %229 = vector.shape_cast %228 : vector<1x8x32xf32> to vector<8x32xf32>
    %230 = vector.shape_cast %227 : vector<8x32xf32> to vector<1x8x32xf32>
    tpu.vector_store %arg12[%c0_140, %c0_141, %c0_142], %230 {strides = array<i32>} : memref<2x8x32xf32, #tpu.memory_space<vmem>>, vector<1x8x32xf32>,
    %c0_143 = arith.constant 0 : index
    %c0_144 = arith.constant 0 : index
    %231 = vector.load %arg17[%c0_143, %c0_144] : memref<8x32xf32, #tpu.memory_space<vmem>>, vector<8x32xf32>
    %c0_145 = arith.constant 0 : index
    %c0_146 = arith.constant 0 : index
    %c0_147 = arith.constant 0 : index
    %232 = vector.load %arg13[%c0_145, %c0_146, %c0_147] : memref<2x8x32xf32, #tpu.memory_space<vmem>>, vector<1x8x32xf32>
    %233 = vector.shape_cast %232 : vector<1x8x32xf32> to vector<8x32xf32>
    %234 = vector.shape_cast %231 : vector<8x32xf32> to vector<1x8x32xf32>
    tpu.vector_store %arg13[%c0_145, %c0_146, %c0_147], %234 {strides = array<i32>} : memref<2x8x32xf32, #tpu.memory_space<vmem>>, vector<1x8x32xf32>,
    %c0_148 = arith.constant 0 : index
    %c0_149 = arith.constant 0 : index
    %235 = vector.load %arg14[%c0_148, %c0_149] : memref<64x32xf32, #tpu.memory_space<vmem>>, vector<64x32xf32>
    %236 = arith.truncf %235 : vector<64x32xf32> to vector<64x32xbf16>
    %c0_150 = arith.constant 0 : index
    %c0_151 = arith.constant 0 : index
    %237 = vector.load %arg4[%c0_150, %c0_151] : memref<32x128xbf16, #tpu.memory_space<vmem>>, vector<32x128xbf16>
    %cst_152 = arith.constant dense<0.000000e+00> : vector<64x128xf32>
    %238 = tpu.matmul %236, %237, %cst_152 {dimension_numbers = #tpu.dot_dimension_numbers<[1], [0], [0], [1], [0, 0, 1, 1], [], []>} : vector<64x32xbf16>, vector<32x128xbf16>, vector<64x128xf32> -> vector<64x128xf32>
    %c0_153 = arith.constant 0 : index
    %c0_154 = arith.constant 0 : index
    %239 = vector.load %arg6[%c0_153, %c0_154] : memref<1x128xf32, #tpu.memory_space<vmem>>, vector<1x128xf32>
    %240 = vector.broadcast %239 : vector<1x128xf32> to vector<64x128xf32>
    %241 = arith.addf %238, %240 : vector<64x128xf32>
    %c0_155 = arith.constant 0 : index
    %c0_156 = arith.constant 0 : index
    %242 = vector.load %arg15[%c0_155, %c0_156] : memref<64x128xf32, #tpu.memory_space<vmem>>, vector<64x128xf32>
    tpu.vector_store %arg15[%c0_155, %c0_156], %241 {strides = array<i32>} : memref<64x128xf32, #tpu.memory_space<vmem>>, vector<64x128xf32>,
    %c1 = arith.constant 1 : index
    %c0_157 = arith.constant 0 : index
    %c0_158 = arith.constant 0 : index
    %243 = vector.load %arg7[%c1, %c0_157, %c0_158] : memref<2x8x32xf32, #tpu.memory_space<vmem>>, vector<1x8x32xf32>
    %244 = vector.shape_cast %243 : vector<1x8x32xf32> to vector<8x32xf32>
    %c0_159 = arith.constant 0 : index
    %c0_160 = arith.constant 0 : index
    %245 = vector.load %arg16[%c0_159, %c0_160] : memref<8x32xf32, #tpu.memory_space<vmem>>, vector<8x32xf32>
    tpu.vector_store %arg16[%c0_159, %c0_160], %244 {strides = array<i32>} : memref<8x32xf32, #tpu.memory_space<vmem>>, vector<8x32xf32>,
    %c1_161 = arith.constant 1 : index
    %c0_162 = arith.constant 0 : index
    %c0_163 = arith.constant 0 : index
    %246 = vector.load %arg8[%c1_161, %c0_162, %c0_163] : memref<2x8x32xf32, #tpu.memory_space<vmem>>, vector<1x8x32xf32>
    %247 = vector.shape_cast %246 : vector<1x8x32xf32> to vector<8x32xf32>
    %c0_164 = arith.constant 0 : index
    %c0_165 = arith.constant 0 : index
    %248 = vector.load %arg17[%c0_164, %c0_165] : memref<8x32xf32, #tpu.memory_space<vmem>>, vector<8x32xf32>
    tpu.vector_store %arg17[%c0_164, %c0_165], %247 {strides = array<i32>} : memref<8x32xf32, #tpu.memory_space<vmem>>, vector<8x32xf32>,
    %c0_166 = arith.constant 0 : index
    %c0_167 = arith.constant 0 : index
    %249 = vector.load %arg15[%c0_166, %c0_167] : memref<64x128xf32, #tpu.memory_space<vmem>>, vector<8x128xf32>
    %c0_168 = arith.constant 0 : index
    %c0_169 = arith.constant 0 : index
    %250 = vector.load %arg16[%c0_168, %c0_169] : memref<8x32xf32, #tpu.memory_space<vmem>>, vector<8x32xf32>
    %251 = arith.truncf %250 : vector<8x32xf32> to vector<8x32xbf16>
    %c0_170 = arith.constant 0 : index
    %c0_171 = arith.constant 0 : index
    %252 = vector.load %arg5[%c0_170, %c0_171] : memref<32x128xbf16, #tpu.memory_space<vmem>>, vector<32x128xbf16>
    %cst_172 = arith.constant dense<0.000000e+00> : vector<8x128xf32>
    %253 = tpu.matmul %251, %252, %cst_172 {dimension_numbers = #tpu.dot_dimension_numbers<[1], [0], [0], [1], [0, 0, 1, 1], [], []>} : vector<8x32xbf16>, vector<32x128xbf16>, vector<8x128xf32> -> vector<8x128xf32>
    %254 = arith.addf %249, %253 : vector<8x128xf32>
    %255 = math.tanh %254 : vector<8x128xf32>
    %256 = arith.negf %254 : vector<8x128xf32>
    %257 = math.exp %256 : vector<8x128xf32>
    %cst_173 = arith.constant 1.000000e+00 : f32
    %258 = vector.broadcast %cst_173 : f32 to vector<8x128xf32>
    %259 = arith.addf %258, %257 : vector<8x128xf32>
    %260 = arith.divf %258, %259 : vector<8x128xf32>
    %261 = arith.select %5, %255, %260 : vector<8x128xi1>, vector<8x128xf32>
    %262 = vector.extract_strided_slice %261 {offsets = [0, 0], sizes = [8, 32], strides = [1, 1]} : vector<8x128xf32> to vector<8x32xf32>
    %263 = vector.extract_strided_slice %261 {offsets = [0, 32], sizes = [8, 32], strides = [1, 1]} : vector<8x128xf32> to vector<8x32xf32>
    %264 = vector.extract_strided_slice %261 {offsets = [0, 64], sizes = [8, 32], strides = [1, 1]} : vector<8x128xf32> to vector<8x32xf32>
    %265 = vector.extract_strided_slice %261 {offsets = [0, 96], sizes = [8, 32], strides = [1, 1]} : vector<8x128xf32> to vector<8x32xf32>
    %c0_174 = arith.constant 0 : index
    %c0_175 = arith.constant 0 : index
    %266 = vector.load %arg17[%c0_174, %c0_175] : memref<8x32xf32, #tpu.memory_space<vmem>>, vector<8x32xf32>
    %267 = arith.mulf %263, %266 : vector<8x32xf32>
    %268 = arith.mulf %262, %264 : vector<8x32xf32>
    %269 = arith.addf %267, %268 : vector<8x32xf32>
    %270 = math.tanh %269 : vector<8x32xf32>
    %271 = arith.mulf %265, %270 : vector<8x32xf32>
    %c0_176 = arith.constant 0 : index
    %c0_177 = arith.constant 0 : index
    %272 = vector.load %arg17[%c0_176, %c0_177] : memref<8x32xf32, #tpu.memory_space<vmem>>, vector<8x32xf32>
    tpu.vector_store %arg17[%c0_176, %c0_177], %269 {strides = array<i32>} : memref<8x32xf32, #tpu.memory_space<vmem>>, vector<8x32xf32>,
    %c0_178 = arith.constant 0 : index
    %c0_179 = arith.constant 0 : index
    %273 = vector.load %arg16[%c0_178, %c0_179] : memref<8x32xf32, #tpu.memory_space<vmem>>, vector<8x32xf32>
    tpu.vector_store %arg16[%c0_178, %c0_179], %271 {strides = array<i32>} : memref<8x32xf32, #tpu.memory_space<vmem>>, vector<8x32xf32>,
    %c0_180 = arith.constant 0 : index
    %c0_181 = arith.constant 0 : index
    %274 = vector.load %arg14[%c0_180, %c0_181] : memref<64x32xf32, #tpu.memory_space<vmem>>, vector<8x32xf32>
    tpu.vector_store %arg14[%c0_180, %c0_181], %271 {strides = array<i32>} : memref<64x32xf32, #tpu.memory_space<vmem>>, vector<8x32xf32>,
    %c8_182 = arith.constant 8 : index
    %c0_183 = arith.constant 0 : index
    %275 = vector.load %arg15[%c8_182, %c0_183] : memref<64x128xf32, #tpu.memory_space<vmem>>, vector<8x128xf32>
    %c0_184 = arith.constant 0 : index
    %c0_185 = arith.constant 0 : index
    %276 = vector.load %arg16[%c0_184, %c0_185] : memref<8x32xf32, #tpu.memory_space<vmem>>, vector<8x32xf32>
    %277 = arith.truncf %276 : vector<8x32xf32> to vector<8x32xbf16>
    %c0_186 = arith.constant 0 : index
    %c0_187 = arith.constant 0 : index
    %278 = vector.load %arg5[%c0_186, %c0_187] : memref<32x128xbf16, #tpu.memory_space<vmem>>, vector<32x128xbf16>
    %cst_188 = arith.constant dense<0.000000e+00> : vector<8x128xf32>
    %279 = tpu.matmul %277, %278, %cst_188 {dimension_numbers = #tpu.dot_dimension_numbers<[1], [0], [0], [1], [0, 0, 1, 1], [], []>} : vector<8x32xbf16>, vector<32x128xbf16>, vector<8x128xf32> -> vector<8x128xf32>
    %280 = arith.addf %275, %279 : vector<8x128xf32>
    %281 = math.tanh %280 : vector<8x128xf32>
    %282 = arith.negf %280 : vector<8x128xf32>
    %283 = math.exp %282 : vector<8x128xf32>
    %cst_189 = arith.constant 1.000000e+00 : f32
    %284 = vector.broadcast %cst_189 : f32 to vector<8x128xf32>
    %285 = arith.addf %284, %283 : vector<8x128xf32>
    %286 = arith.divf %284, %285 : vector<8x128xf32>
    %287 = arith.select %5, %281, %286 : vector<8x128xi1>, vector<8x128xf32>
    %288 = vector.extract_strided_slice %287 {offsets = [0, 0], sizes = [8, 32], strides = [1, 1]} : vector<8x128xf32> to vector<8x32xf32>
    %289 = vector.extract_strided_slice %287 {offsets = [0, 32], sizes = [8, 32], strides = [1, 1]} : vector<8x128xf32> to vector<8x32xf32>
    %290 = vector.extract_strided_slice %287 {offsets = [0, 64], sizes = [8, 32], strides = [1, 1]} : vector<8x128xf32> to vector<8x32xf32>
    %291 = vector.extract_strided_slice %287 {offsets = [0, 96], sizes = [8, 32], strides = [1, 1]} : vector<8x128xf32> to vector<8x32xf32>
    %c0_190 = arith.constant 0 : index
    %c0_191 = arith.constant 0 : index
    %292 = vector.load %arg17[%c0_190, %c0_191] : memref<8x32xf32, #tpu.memory_space<vmem>>, vector<8x32xf32>
    %293 = arith.mulf %289, %292 : vector<8x32xf32>
    %294 = arith.mulf %288, %290 : vector<8x32xf32>
    %295 = arith.addf %293, %294 : vector<8x32xf32>
    %296 = math.tanh %295 : vector<8x32xf32>
    %297 = arith.mulf %291, %296 : vector<8x32xf32>
    %c0_192 = arith.constant 0 : index
    %c0_193 = arith.constant 0 : index
    %298 = vector.load %arg17[%c0_192, %c0_193] : memref<8x32xf32, #tpu.memory_space<vmem>>, vector<8x32xf32>
    tpu.vector_store %arg17[%c0_192, %c0_193], %295 {strides = array<i32>} : memref<8x32xf32, #tpu.memory_space<vmem>>, vector<8x32xf32>,
    %c0_194 = arith.constant 0 : index
    %c0_195 = arith.constant 0 : index
    %299 = vector.load %arg16[%c0_194, %c0_195] : memref<8x32xf32, #tpu.memory_space<vmem>>, vector<8x32xf32>
    tpu.vector_store %arg16[%c0_194, %c0_195], %297 {strides = array<i32>} : memref<8x32xf32, #tpu.memory_space<vmem>>, vector<8x32xf32>,
    %c8_196 = arith.constant 8 : index
    %c0_197 = arith.constant 0 : index
    %300 = vector.load %arg14[%c8_196, %c0_197] : memref<64x32xf32, #tpu.memory_space<vmem>>, vector<8x32xf32>
    tpu.vector_store %arg14[%c8_196, %c0_197], %297 {strides = array<i32>} : memref<64x32xf32, #tpu.memory_space<vmem>>, vector<8x32xf32>,
    %c16_198 = arith.constant 16 : index
    %c0_199 = arith.constant 0 : index
    %301 = vector.load %arg15[%c16_198, %c0_199] : memref<64x128xf32, #tpu.memory_space<vmem>>, vector<8x128xf32>
    %c0_200 = arith.constant 0 : index
    %c0_201 = arith.constant 0 : index
    %302 = vector.load %arg16[%c0_200, %c0_201] : memref<8x32xf32, #tpu.memory_space<vmem>>, vector<8x32xf32>
    %303 = arith.truncf %302 : vector<8x32xf32> to vector<8x32xbf16>
    %c0_202 = arith.constant 0 : index
    %c0_203 = arith.constant 0 : index
    %304 = vector.load %arg5[%c0_202, %c0_203] : memref<32x128xbf16, #tpu.memory_space<vmem>>, vector<32x128xbf16>
    %cst_204 = arith.constant dense<0.000000e+00> : vector<8x128xf32>
    %305 = tpu.matmul %303, %304, %cst_204 {dimension_numbers = #tpu.dot_dimension_numbers<[1], [0], [0], [1], [0, 0, 1, 1], [], []>} : vector<8x32xbf16>, vector<32x128xbf16>, vector<8x128xf32> -> vector<8x128xf32>
    %306 = arith.addf %301, %305 : vector<8x128xf32>
    %307 = math.tanh %306 : vector<8x128xf32>
    %308 = arith.negf %306 : vector<8x128xf32>
    %309 = math.exp %308 : vector<8x128xf32>
    %cst_205 = arith.constant 1.000000e+00 : f32
    %310 = vector.broadcast %cst_205 : f32 to vector<8x128xf32>
    %311 = arith.addf %310, %309 : vector<8x128xf32>
    %312 = arith.divf %310, %311 : vector<8x128xf32>
    %313 = arith.select %5, %307, %312 : vector<8x128xi1>, vector<8x128xf32>
    %314 = vector.extract_strided_slice %313 {offsets = [0, 0], sizes = [8, 32], strides = [1, 1]} : vector<8x128xf32> to vector<8x32xf32>
    %315 = vector.extract_strided_slice %313 {offsets = [0, 32], sizes = [8, 32], strides = [1, 1]} : vector<8x128xf32> to vector<8x32xf32>
    %316 = vector.extract_strided_slice %313 {offsets = [0, 64], sizes = [8, 32], strides = [1, 1]} : vector<8x128xf32> to vector<8x32xf32>
    %317 = vector.extract_strided_slice %313 {offsets = [0, 96], sizes = [8, 32], strides = [1, 1]} : vector<8x128xf32> to vector<8x32xf32>
    %c0_206 = arith.constant 0 : index
    %c0_207 = arith.constant 0 : index
    %318 = vector.load %arg17[%c0_206, %c0_207] : memref<8x32xf32, #tpu.memory_space<vmem>>, vector<8x32xf32>
    %319 = arith.mulf %315, %318 : vector<8x32xf32>
    %320 = arith.mulf %314, %316 : vector<8x32xf32>
    %321 = arith.addf %319, %320 : vector<8x32xf32>
    %322 = math.tanh %321 : vector<8x32xf32>
    %323 = arith.mulf %317, %322 : vector<8x32xf32>
    %c0_208 = arith.constant 0 : index
    %c0_209 = arith.constant 0 : index
    %324 = vector.load %arg17[%c0_208, %c0_209] : memref<8x32xf32, #tpu.memory_space<vmem>>, vector<8x32xf32>
    tpu.vector_store %arg17[%c0_208, %c0_209], %321 {strides = array<i32>} : memref<8x32xf32, #tpu.memory_space<vmem>>, vector<8x32xf32>,
    %c0_210 = arith.constant 0 : index
    %c0_211 = arith.constant 0 : index
    %325 = vector.load %arg16[%c0_210, %c0_211] : memref<8x32xf32, #tpu.memory_space<vmem>>, vector<8x32xf32>
    tpu.vector_store %arg16[%c0_210, %c0_211], %323 {strides = array<i32>} : memref<8x32xf32, #tpu.memory_space<vmem>>, vector<8x32xf32>,
    %c16_212 = arith.constant 16 : index
    %c0_213 = arith.constant 0 : index
    %326 = vector.load %arg14[%c16_212, %c0_213] : memref<64x32xf32, #tpu.memory_space<vmem>>, vector<8x32xf32>
    tpu.vector_store %arg14[%c16_212, %c0_213], %323 {strides = array<i32>} : memref<64x32xf32, #tpu.memory_space<vmem>>, vector<8x32xf32>,
    %c24_214 = arith.constant 24 : index
    %c0_215 = arith.constant 0 : index
    %327 = vector.load %arg15[%c24_214, %c0_215] : memref<64x128xf32, #tpu.memory_space<vmem>>, vector<8x128xf32>
    %c0_216 = arith.constant 0 : index
    %c0_217 = arith.constant 0 : index
    %328 = vector.load %arg16[%c0_216, %c0_217] : memref<8x32xf32, #tpu.memory_space<vmem>>, vector<8x32xf32>
    %329 = arith.truncf %328 : vector<8x32xf32> to vector<8x32xbf16>
    %c0_218 = arith.constant 0 : index
    %c0_219 = arith.constant 0 : index
    %330 = vector.load %arg5[%c0_218, %c0_219] : memref<32x128xbf16, #tpu.memory_space<vmem>>, vector<32x128xbf16>
    %cst_220 = arith.constant dense<0.000000e+00> : vector<8x128xf32>
    %331 = tpu.matmul %329, %330, %cst_220 {dimension_numbers = #tpu.dot_dimension_numbers<[1], [0], [0], [1], [0, 0, 1, 1], [], []>} : vector<8x32xbf16>, vector<32x128xbf16>, vector<8x128xf32> -> vector<8x128xf32>
    %332 = arith.addf %327, %331 : vector<8x128xf32>
    %333 = math.tanh %332 : vector<8x128xf32>
    %334 = arith.negf %332 : vector<8x128xf32>
    %335 = math.exp %334 : vector<8x128xf32>
    %cst_221 = arith.constant 1.000000e+00 : f32
    %336 = vector.broadcast %cst_221 : f32 to vector<8x128xf32>
    %337 = arith.addf %336, %335 : vector<8x128xf32>
    %338 = arith.divf %336, %337 : vector<8x128xf32>
    %339 = arith.select %5, %333, %338 : vector<8x128xi1>, vector<8x128xf32>
    %340 = vector.extract_strided_slice %339 {offsets = [0, 0], sizes = [8, 32], strides = [1, 1]} : vector<8x128xf32> to vector<8x32xf32>
    %341 = vector.extract_strided_slice %339 {offsets = [0, 32], sizes = [8, 32], strides = [1, 1]} : vector<8x128xf32> to vector<8x32xf32>
    %342 = vector.extract_strided_slice %339 {offsets = [0, 64], sizes = [8, 32], strides = [1, 1]} : vector<8x128xf32> to vector<8x32xf32>
    %343 = vector.extract_strided_slice %339 {offsets = [0, 96], sizes = [8, 32], strides = [1, 1]} : vector<8x128xf32> to vector<8x32xf32>
    %c0_222 = arith.constant 0 : index
    %c0_223 = arith.constant 0 : index
    %344 = vector.load %arg17[%c0_222, %c0_223] : memref<8x32xf32, #tpu.memory_space<vmem>>, vector<8x32xf32>
    %345 = arith.mulf %341, %344 : vector<8x32xf32>
    %346 = arith.mulf %340, %342 : vector<8x32xf32>
    %347 = arith.addf %345, %346 : vector<8x32xf32>
    %348 = math.tanh %347 : vector<8x32xf32>
    %349 = arith.mulf %343, %348 : vector<8x32xf32>
    %c0_224 = arith.constant 0 : index
    %c0_225 = arith.constant 0 : index
    %350 = vector.load %arg17[%c0_224, %c0_225] : memref<8x32xf32, #tpu.memory_space<vmem>>, vector<8x32xf32>
    tpu.vector_store %arg17[%c0_224, %c0_225], %347 {strides = array<i32>} : memref<8x32xf32, #tpu.memory_space<vmem>>, vector<8x32xf32>,
    %c0_226 = arith.constant 0 : index
    %c0_227 = arith.constant 0 : index
    %351 = vector.load %arg16[%c0_226, %c0_227] : memref<8x32xf32, #tpu.memory_space<vmem>>, vector<8x32xf32>
    tpu.vector_store %arg16[%c0_226, %c0_227], %349 {strides = array<i32>} : memref<8x32xf32, #tpu.memory_space<vmem>>, vector<8x32xf32>,
    %c24_228 = arith.constant 24 : index
    %c0_229 = arith.constant 0 : index
    %352 = vector.load %arg14[%c24_228, %c0_229] : memref<64x32xf32, #tpu.memory_space<vmem>>, vector<8x32xf32>
    tpu.vector_store %arg14[%c24_228, %c0_229], %349 {strides = array<i32>} : memref<64x32xf32, #tpu.memory_space<vmem>>, vector<8x32xf32>,
    %c32_230 = arith.constant 32 : index
    %c0_231 = arith.constant 0 : index
    %353 = vector.load %arg15[%c32_230, %c0_231] : memref<64x128xf32, #tpu.memory_space<vmem>>, vector<8x128xf32>
    %c0_232 = arith.constant 0 : index
    %c0_233 = arith.constant 0 : index
    %354 = vector.load %arg16[%c0_232, %c0_233] : memref<8x32xf32, #tpu.memory_space<vmem>>, vector<8x32xf32>
    %355 = arith.truncf %354 : vector<8x32xf32> to vector<8x32xbf16>
    %c0_234 = arith.constant 0 : index
    %c0_235 = arith.constant 0 : index
    %356 = vector.load %arg5[%c0_234, %c0_235] : memref<32x128xbf16, #tpu.memory_space<vmem>>, vector<32x128xbf16>
    %cst_236 = arith.constant dense<0.000000e+00> : vector<8x128xf32>
    %357 = tpu.matmul %355, %356, %cst_236 {dimension_numbers = #tpu.dot_dimension_numbers<[1], [0], [0], [1], [0, 0, 1, 1], [], []>} : vector<8x32xbf16>, vector<32x128xbf16>, vector<8x128xf32> -> vector<8x128xf32>
    %358 = arith.addf %353, %357 : vector<8x128xf32>
    %359 = math.tanh %358 : vector<8x128xf32>
    %360 = arith.negf %358 : vector<8x128xf32>
    %361 = math.exp %360 : vector<8x128xf32>
    %cst_237 = arith.constant 1.000000e+00 : f32
    %362 = vector.broadcast %cst_237 : f32 to vector<8x128xf32>
    %363 = arith.addf %362, %361 : vector<8x128xf32>
    %364 = arith.divf %362, %363 : vector<8x128xf32>
    %365 = arith.select %5, %359, %364 : vector<8x128xi1>, vector<8x128xf32>
    %366 = vector.extract_strided_slice %365 {offsets = [0, 0], sizes = [8, 32], strides = [1, 1]} : vector<8x128xf32> to vector<8x32xf32>
    %367 = vector.extract_strided_slice %365 {offsets = [0, 32], sizes = [8, 32], strides = [1, 1]} : vector<8x128xf32> to vector<8x32xf32>
    %368 = vector.extract_strided_slice %365 {offsets = [0, 64], sizes = [8, 32], strides = [1, 1]} : vector<8x128xf32> to vector<8x32xf32>
    %369 = vector.extract_strided_slice %365 {offsets = [0, 96], sizes = [8, 32], strides = [1, 1]} : vector<8x128xf32> to vector<8x32xf32>
    %c0_238 = arith.constant 0 : index
    %c0_239 = arith.constant 0 : index
    %370 = vector.load %arg17[%c0_238, %c0_239] : memref<8x32xf32, #tpu.memory_space<vmem>>, vector<8x32xf32>
    %371 = arith.mulf %367, %370 : vector<8x32xf32>
    %372 = arith.mulf %366, %368 : vector<8x32xf32>
    %373 = arith.addf %371, %372 : vector<8x32xf32>
    %374 = math.tanh %373 : vector<8x32xf32>
    %375 = arith.mulf %369, %374 : vector<8x32xf32>
    %c0_240 = arith.constant 0 : index
    %c0_241 = arith.constant 0 : index
    %376 = vector.load %arg17[%c0_240, %c0_241] : memref<8x32xf32, #tpu.memory_space<vmem>>, vector<8x32xf32>
    tpu.vector_store %arg17[%c0_240, %c0_241], %373 {strides = array<i32>} : memref<8x32xf32, #tpu.memory_space<vmem>>, vector<8x32xf32>,
    %c0_242 = arith.constant 0 : index
    %c0_243 = arith.constant 0 : index
    %377 = vector.load %arg16[%c0_242, %c0_243] : memref<8x32xf32, #tpu.memory_space<vmem>>, vector<8x32xf32>
    tpu.vector_store %arg16[%c0_242, %c0_243], %375 {strides = array<i32>} : memref<8x32xf32, #tpu.memory_space<vmem>>, vector<8x32xf32>,
    %c32_244 = arith.constant 32 : index
    %c0_245 = arith.constant 0 : index
    %378 = vector.load %arg14[%c32_244, %c0_245] : memref<64x32xf32, #tpu.memory_space<vmem>>, vector<8x32xf32>
    tpu.vector_store %arg14[%c32_244, %c0_245], %375 {strides = array<i32>} : memref<64x32xf32, #tpu.memory_space<vmem>>, vector<8x32xf32>,
    %c40_246 = arith.constant 40 : index
    %c0_247 = arith.constant 0 : index
    %379 = vector.load %arg15[%c40_246, %c0_247] : memref<64x128xf32, #tpu.memory_space<vmem>>, vector<8x128xf32>
    %c0_248 = arith.constant 0 : index
    %c0_249 = arith.constant 0 : index
    %380 = vector.load %arg16[%c0_248, %c0_249] : memref<8x32xf32, #tpu.memory_space<vmem>>, vector<8x32xf32>
    %381 = arith.truncf %380 : vector<8x32xf32> to vector<8x32xbf16>
    %c0_250 = arith.constant 0 : index
    %c0_251 = arith.constant 0 : index
    %382 = vector.load %arg5[%c0_250, %c0_251] : memref<32x128xbf16, #tpu.memory_space<vmem>>, vector<32x128xbf16>
    %cst_252 = arith.constant dense<0.000000e+00> : vector<8x128xf32>
    %383 = tpu.matmul %381, %382, %cst_252 {dimension_numbers = #tpu.dot_dimension_numbers<[1], [0], [0], [1], [0, 0, 1, 1], [], []>} : vector<8x32xbf16>, vector<32x128xbf16>, vector<8x128xf32> -> vector<8x128xf32>
    %384 = arith.addf %379, %383 : vector<8x128xf32>
    %385 = math.tanh %384 : vector<8x128xf32>
    %386 = arith.negf %384 : vector<8x128xf32>
    %387 = math.exp %386 : vector<8x128xf32>
    %cst_253 = arith.constant 1.000000e+00 : f32
    %388 = vector.broadcast %cst_253 : f32 to vector<8x128xf32>
    %389 = arith.addf %388, %387 : vector<8x128xf32>
    %390 = arith.divf %388, %389 : vector<8x128xf32>
    %391 = arith.select %5, %385, %390 : vector<8x128xi1>, vector<8x128xf32>
    %392 = vector.extract_strided_slice %391 {offsets = [0, 0], sizes = [8, 32], strides = [1, 1]} : vector<8x128xf32> to vector<8x32xf32>
    %393 = vector.extract_strided_slice %391 {offsets = [0, 32], sizes = [8, 32], strides = [1, 1]} : vector<8x128xf32> to vector<8x32xf32>
    %394 = vector.extract_strided_slice %391 {offsets = [0, 64], sizes = [8, 32], strides = [1, 1]} : vector<8x128xf32> to vector<8x32xf32>
    %395 = vector.extract_strided_slice %391 {offsets = [0, 96], sizes = [8, 32], strides = [1, 1]} : vector<8x128xf32> to vector<8x32xf32>
    %c0_254 = arith.constant 0 : index
    %c0_255 = arith.constant 0 : index
    %396 = vector.load %arg17[%c0_254, %c0_255] : memref<8x32xf32, #tpu.memory_space<vmem>>, vector<8x32xf32>
    %397 = arith.mulf %393, %396 : vector<8x32xf32>
    %398 = arith.mulf %392, %394 : vector<8x32xf32>
    %399 = arith.addf %397, %398 : vector<8x32xf32>
    %400 = math.tanh %399 : vector<8x32xf32>
    %401 = arith.mulf %395, %400 : vector<8x32xf32>
    %c0_256 = arith.constant 0 : index
    %c0_257 = arith.constant 0 : index
    %402 = vector.load %arg17[%c0_256, %c0_257] : memref<8x32xf32, #tpu.memory_space<vmem>>, vector<8x32xf32>
    tpu.vector_store %arg17[%c0_256, %c0_257], %399 {strides = array<i32>} : memref<8x32xf32, #tpu.memory_space<vmem>>, vector<8x32xf32>,
    %c0_258 = arith.constant 0 : index
    %c0_259 = arith.constant 0 : index
    %403 = vector.load %arg16[%c0_258, %c0_259] : memref<8x32xf32, #tpu.memory_space<vmem>>, vector<8x32xf32>
    tpu.vector_store %arg16[%c0_258, %c0_259], %401 {strides = array<i32>} : memref<8x32xf32, #tpu.memory_space<vmem>>, vector<8x32xf32>,
    %c40_260 = arith.constant 40 : index
    %c0_261 = arith.constant 0 : index
    %404 = vector.load %arg14[%c40_260, %c0_261] : memref<64x32xf32, #tpu.memory_space<vmem>>, vector<8x32xf32>
    tpu.vector_store %arg14[%c40_260, %c0_261], %401 {strides = array<i32>} : memref<64x32xf32, #tpu.memory_space<vmem>>, vector<8x32xf32>,
    %c48_262 = arith.constant 48 : index
    %c0_263 = arith.constant 0 : index
    %405 = vector.load %arg15[%c48_262, %c0_263] : memref<64x128xf32, #tpu.memory_space<vmem>>, vector<8x128xf32>
    %c0_264 = arith.constant 0 : index
    %c0_265 = arith.constant 0 : index
    %406 = vector.load %arg16[%c0_264, %c0_265] : memref<8x32xf32, #tpu.memory_space<vmem>>, vector<8x32xf32>
    %407 = arith.truncf %406 : vector<8x32xf32> to vector<8x32xbf16>
    %c0_266 = arith.constant 0 : index
    %c0_267 = arith.constant 0 : index
    %408 = vector.load %arg5[%c0_266, %c0_267] : memref<32x128xbf16, #tpu.memory_space<vmem>>, vector<32x128xbf16>
    %cst_268 = arith.constant dense<0.000000e+00> : vector<8x128xf32>
    %409 = tpu.matmul %407, %408, %cst_268 {dimension_numbers = #tpu.dot_dimension_numbers<[1], [0], [0], [1], [0, 0, 1, 1], [], []>} : vector<8x32xbf16>, vector<32x128xbf16>, vector<8x128xf32> -> vector<8x128xf32>
    %410 = arith.addf %405, %409 : vector<8x128xf32>
    %411 = math.tanh %410 : vector<8x128xf32>
    %412 = arith.negf %410 : vector<8x128xf32>
    %413 = math.exp %412 : vector<8x128xf32>
    %cst_269 = arith.constant 1.000000e+00 : f32
    %414 = vector.broadcast %cst_269 : f32 to vector<8x128xf32>
    %415 = arith.addf %414, %413 : vector<8x128xf32>
    %416 = arith.divf %414, %415 : vector<8x128xf32>
    %417 = arith.select %5, %411, %416 : vector<8x128xi1>, vector<8x128xf32>
    %418 = vector.extract_strided_slice %417 {offsets = [0, 0], sizes = [8, 32], strides = [1, 1]} : vector<8x128xf32> to vector<8x32xf32>
    %419 = vector.extract_strided_slice %417 {offsets = [0, 32], sizes = [8, 32], strides = [1, 1]} : vector<8x128xf32> to vector<8x32xf32>
    %420 = vector.extract_strided_slice %417 {offsets = [0, 64], sizes = [8, 32], strides = [1, 1]} : vector<8x128xf32> to vector<8x32xf32>
    %421 = vector.extract_strided_slice %417 {offsets = [0, 96], sizes = [8, 32], strides = [1, 1]} : vector<8x128xf32> to vector<8x32xf32>
    %c0_270 = arith.constant 0 : index
    %c0_271 = arith.constant 0 : index
    %422 = vector.load %arg17[%c0_270, %c0_271] : memref<8x32xf32, #tpu.memory_space<vmem>>, vector<8x32xf32>
    %423 = arith.mulf %419, %422 : vector<8x32xf32>
    %424 = arith.mulf %418, %420 : vector<8x32xf32>
    %425 = arith.addf %423, %424 : vector<8x32xf32>
    %426 = math.tanh %425 : vector<8x32xf32>
    %427 = arith.mulf %421, %426 : vector<8x32xf32>
    %c0_272 = arith.constant 0 : index
    %c0_273 = arith.constant 0 : index
    %428 = vector.load %arg17[%c0_272, %c0_273] : memref<8x32xf32, #tpu.memory_space<vmem>>, vector<8x32xf32>
    tpu.vector_store %arg17[%c0_272, %c0_273], %425 {strides = array<i32>} : memref<8x32xf32, #tpu.memory_space<vmem>>, vector<8x32xf32>,
    %c0_274 = arith.constant 0 : index
    %c0_275 = arith.constant 0 : index
    %429 = vector.load %arg16[%c0_274, %c0_275] : memref<8x32xf32, #tpu.memory_space<vmem>>, vector<8x32xf32>
    tpu.vector_store %arg16[%c0_274, %c0_275], %427 {strides = array<i32>} : memref<8x32xf32, #tpu.memory_space<vmem>>, vector<8x32xf32>,
    %c48_276 = arith.constant 48 : index
    %c0_277 = arith.constant 0 : index
    %430 = vector.load %arg14[%c48_276, %c0_277] : memref<64x32xf32, #tpu.memory_space<vmem>>, vector<8x32xf32>
    tpu.vector_store %arg14[%c48_276, %c0_277], %427 {strides = array<i32>} : memref<64x32xf32, #tpu.memory_space<vmem>>, vector<8x32xf32>,
    %c56_278 = arith.constant 56 : index
    %c0_279 = arith.constant 0 : index
    %431 = vector.load %arg15[%c56_278, %c0_279] : memref<64x128xf32, #tpu.memory_space<vmem>>, vector<8x128xf32>
    %c0_280 = arith.constant 0 : index
    %c0_281 = arith.constant 0 : index
    %432 = vector.load %arg16[%c0_280, %c0_281] : memref<8x32xf32, #tpu.memory_space<vmem>>, vector<8x32xf32>
    %433 = arith.truncf %432 : vector<8x32xf32> to vector<8x32xbf16>
    %c0_282 = arith.constant 0 : index
    %c0_283 = arith.constant 0 : index
    %434 = vector.load %arg5[%c0_282, %c0_283] : memref<32x128xbf16, #tpu.memory_space<vmem>>, vector<32x128xbf16>
    %cst_284 = arith.constant dense<0.000000e+00> : vector<8x128xf32>
    %435 = tpu.matmul %433, %434, %cst_284 {dimension_numbers = #tpu.dot_dimension_numbers<[1], [0], [0], [1], [0, 0, 1, 1], [], []>} : vector<8x32xbf16>, vector<32x128xbf16>, vector<8x128xf32> -> vector<8x128xf32>
    %436 = arith.addf %431, %435 : vector<8x128xf32>
    %437 = math.tanh %436 : vector<8x128xf32>
    %438 = arith.negf %436 : vector<8x128xf32>
    %439 = math.exp %438 : vector<8x128xf32>
    %cst_285 = arith.constant 1.000000e+00 : f32
    %440 = vector.broadcast %cst_285 : f32 to vector<8x128xf32>
    %441 = arith.addf %440, %439 : vector<8x128xf32>
    %442 = arith.divf %440, %441 : vector<8x128xf32>
    %443 = arith.select %5, %437, %442 : vector<8x128xi1>, vector<8x128xf32>
    %444 = vector.extract_strided_slice %443 {offsets = [0, 0], sizes = [8, 32], strides = [1, 1]} : vector<8x128xf32> to vector<8x32xf32>
    %445 = vector.extract_strided_slice %443 {offsets = [0, 32], sizes = [8, 32], strides = [1, 1]} : vector<8x128xf32> to vector<8x32xf32>
    %446 = vector.extract_strided_slice %443 {offsets = [0, 64], sizes = [8, 32], strides = [1, 1]} : vector<8x128xf32> to vector<8x32xf32>
    %447 = vector.extract_strided_slice %443 {offsets = [0, 96], sizes = [8, 32], strides = [1, 1]} : vector<8x128xf32> to vector<8x32xf32>
    %c0_286 = arith.constant 0 : index
    %c0_287 = arith.constant 0 : index
    %448 = vector.load %arg17[%c0_286, %c0_287] : memref<8x32xf32, #tpu.memory_space<vmem>>, vector<8x32xf32>
    %449 = arith.mulf %445, %448 : vector<8x32xf32>
    %450 = arith.mulf %444, %446 : vector<8x32xf32>
    %451 = arith.addf %449, %450 : vector<8x32xf32>
    %452 = math.tanh %451 : vector<8x32xf32>
    %453 = arith.mulf %447, %452 : vector<8x32xf32>
    %c0_288 = arith.constant 0 : index
    %c0_289 = arith.constant 0 : index
    %454 = vector.load %arg17[%c0_288, %c0_289] : memref<8x32xf32, #tpu.memory_space<vmem>>, vector<8x32xf32>
    tpu.vector_store %arg17[%c0_288, %c0_289], %451 {strides = array<i32>} : memref<8x32xf32, #tpu.memory_space<vmem>>, vector<8x32xf32>,
    %c0_290 = arith.constant 0 : index
    %c0_291 = arith.constant 0 : index
    %455 = vector.load %arg16[%c0_290, %c0_291] : memref<8x32xf32, #tpu.memory_space<vmem>>, vector<8x32xf32>
    tpu.vector_store %arg16[%c0_290, %c0_291], %453 {strides = array<i32>} : memref<8x32xf32, #tpu.memory_space<vmem>>, vector<8x32xf32>,
    %c56_292 = arith.constant 56 : index
    %c0_293 = arith.constant 0 : index
    %456 = vector.load %arg14[%c56_292, %c0_293] : memref<64x32xf32, #tpu.memory_space<vmem>>, vector<8x32xf32>
    tpu.vector_store %arg14[%c56_292, %c0_293], %453 {strides = array<i32>} : memref<64x32xf32, #tpu.memory_space<vmem>>, vector<8x32xf32>,
    %c0_294 = arith.constant 0 : index
    %c0_295 = arith.constant 0 : index
    %457 = vector.load %arg16[%c0_294, %c0_295] : memref<8x32xf32, #tpu.memory_space<vmem>>, vector<8x32xf32>
    %c1_296 = arith.constant 1 : index
    %c0_297 = arith.constant 0 : index
    %c0_298 = arith.constant 0 : index
    %458 = vector.load %arg12[%c1_296, %c0_297, %c0_298] : memref<2x8x32xf32, #tpu.memory_space<vmem>>, vector<1x8x32xf32>
    %459 = vector.shape_cast %458 : vector<1x8x32xf32> to vector<8x32xf32>
    %460 = vector.shape_cast %457 : vector<8x32xf32> to vector<1x8x32xf32>
    tpu.vector_store %arg12[%c1_296, %c0_297, %c0_298], %460 {strides = array<i32>} : memref<2x8x32xf32, #tpu.memory_space<vmem>>, vector<1x8x32xf32>,
    %c0_299 = arith.constant 0 : index
    %c0_300 = arith.constant 0 : index
    %461 = vector.load %arg17[%c0_299, %c0_300] : memref<8x32xf32, #tpu.memory_space<vmem>>, vector<8x32xf32>
    %c1_301 = arith.constant 1 : index
    %c0_302 = arith.constant 0 : index
    %c0_303 = arith.constant 0 : index
    %462 = vector.load %arg13[%c1_301, %c0_302, %c0_303] : memref<2x8x32xf32, #tpu.memory_space<vmem>>, vector<1x8x32xf32>
    %463 = vector.shape_cast %462 : vector<1x8x32xf32> to vector<8x32xf32>
    %464 = vector.shape_cast %461 : vector<8x32xf32> to vector<1x8x32xf32>
    tpu.vector_store %arg13[%c1_301, %c0_302, %c0_303], %464 {strides = array<i32>} : memref<2x8x32xf32, #tpu.memory_space<vmem>>, vector<1x8x32xf32>,
    %c0_304 = arith.constant 0 : index
    %c0_305 = arith.constant 0 : index
    %465 = vector.load %arg14[%c0_304, %c0_305] : memref<64x32xf32, #tpu.memory_space<vmem>>, vector<64x32xf32>
    %466 = arith.truncf %465 : vector<64x32xf32> to vector<64x32xbf16>
    %c0_306 = arith.constant 0 : index
    %c0_307 = arith.constant 0 : index
    %467 = vector.load %arg9[%c0_306, %c0_307] : memref<32x128xbf16, #tpu.memory_space<vmem>>, vector<32x128xbf16>
    %cst_308 = arith.constant dense<0.000000e+00> : vector<64x128xf32>
    %468 = tpu.matmul %466, %467, %cst_308 {dimension_numbers = #tpu.dot_dimension_numbers<[1], [0], [0], [1], [0, 0, 1, 1], [], []>} : vector<64x32xbf16>, vector<32x128xbf16>, vector<64x128xf32> -> vector<64x128xf32>
    %c0_309 = arith.constant 0 : index
    %c0_310 = arith.constant 0 : index
    %469 = vector.load %arg10[%c0_309, %c0_310] : memref<1x128xf32, #tpu.memory_space<vmem>>, vector<1x128xf32>
    %470 = vector.broadcast %469 : vector<1x128xf32> to vector<64x128xf32>
    %471 = arith.addf %468, %470 : vector<64x128xf32>
    %c0_311 = arith.constant 0 : index
    %c0_312 = arith.constant 0 : index
    %472 = vector.load %arg11[%c0_311, %c0_312] : memref<64x128xf32, #tpu.memory_space<vmem>>, vector<64x128xf32>
    tpu.vector_store %arg11[%c0_311, %c0_312], %471 {strides = array<i32>} : memref<64x128xf32, #tpu.memory_space<vmem>>, vector<64x128xf32>,
    return
  }
}

</mosaic_0001>

<bundles_post_ra>
// kernel: lstm_model_forward.1
= control target key start
LH: loop header
LB: loop body
LE: loop exit
PB: predicated region body
PF: predicated region fallthrough
CT: control target
= control target key end

     0   :  { %vm95_vm0 = vcmask 261120   ;;  %v42_v21 = vlaneseq  ;;  %s2178_s25 = smov 32   ;;  %s2179_s30 = smov 96   ;;  %s2697_s1 = inlined_call_operand.vmem [shape: bf16[32,128], index: 1, kind: input, shape index: {}]   ;;  %s2698_s7 = inlined_call_operand.vmem [shape: f32[2,8,32], index: 7, kind: input, shape index: {}]   ;;  %s2699_s2 = inlined_call_operand.vmem [shape: bf16[32,128], index: 2, kind: input, shape index: {}]   ;;  %s2700_s3 = inlined_call_operand.vmem [shape: f32[1,128], index: 3, kind: input, shape index: {}]   ;;  %s2701_s0 = inlined_call_operand.vmem [shape: bf16[64,32], index: 0, kind: input, shape index: {}]   ;;  %s2702_s8 = inlined_call_operand.vmem [shape: f32[2,8,32], index: 8, kind: input, shape index: {}]   ;;  %s2703_s4 = inlined_call_operand.vmem [shape: bf16[32,128], index: 4, kind: input, shape index: {}]   ;;  %s2704_s6 = inlined_call_operand.vmem [shape: f32[1,128], index: 6, kind: input, shape index: {}]   ;;  %s2705_s13 = inlined_call_operand.vmem [shape: f32[2,8,32], index: 13, kind: output, shape index: {2}]   ;;  %s2706_s5 = inlined_call_operand.vmem [shape: bf16[32,128], index: 5, kind: input, shape index: {}]   ;;  %s2707_s12 = inlined_call_operand.vmem [shape: f32[2,8,32], index: 12, kind: output, shape index: {1}]   ;;  %s2708_s9 = inlined_call_operand.vmem [shape: bf16[32,128], index: 9, kind: input, shape index: {}]   ;;  %s2709_s10 = inlined_call_operand.vmem [shape: f32[1,128], index: 10, kind: input, shape index: {}]   ;;  %s2710_s11 = inlined_call_operand.vmem [shape: f32[64,128], index: 11, kind: output, shape index: {0}]  }
   0x1   :  { %v2000_v0 = vld [vmem:[%s2697_s1 + $0x8] sm:$0xff]  ;;  %v1999_v1 = vld [vmem:[%s2697_s1] sm:$0xff]  ;;  %v1997_v44 = vld [vmem:[%s2701_s0 + $0x10] sm:$0xff] }
   0x2   :  { %2037 = vmatpush.bf16.msra.mxu1 %v2000_v0  ;;  %114 = vmatpush.bf16.msra.mxu0 %v2000_v0  ;;  %v145_v2 = vld [vmem:[%s2698_s7] sm:$0xff]  ;;  %v2002_v3 = vld [vmem:[%s2699_s2 + $0x8] sm:$0xff]  ;;  %v43_v23 = vand.u32 127, %v42_v21 }
   0x3   :  { %146 = vst.msk [vmem:[#allocation4] sm:$0xff] %vm95_vm0, %v145_v2  ;;  %2038 = vmatpush.bf16.msra.mxu2 %v2000_v0  ;;  %2039 = vmatpush.bf16.msra.mxu3 %v2000_v0  ;;  %v1996_v4 = vld [vmem:[%s2701_s0 + $0x8] sm:$0xff]  ;;  %v1995_v5 = vld [vmem:[%s2701_s0] sm:$0xff] }
   0x4   :  { %v2001_v6 = vld [vmem:[%s2699_s2] sm:$0xff]  ;;  %vm44_vm1 = vcmp.ge.s32.totalorder %v43_v23, 64  ;;  %vm45_vm2 = vcmp.lt.s32.totalorder %v43_v23, 96  ;;  %v2004_v45 = vld [vmem:[%s2699_s2 + $0x8] sm:$0xff]  ;;  %v1998_v23 = vld [vmem:[%s2701_s0 + $0x18] sm:$0xff] }
   0x5   :  { %v2282_v11 = vld [vmem:[%s2700_s3] ss:$0 sm:$0xff]  ;;  %vm2289_vm4 = vmand %vm44_vm1, %vm45_vm2  ;;  %s2177_s3 = smov 64  }
   0x6   :  { %2040 = vmatpush.bf16.msra.mxu1 %v1999_v1  ;;  %115 = vmatpush.bf16.msra.mxu0 %v1999_v1  ;;  %v147_v14 = vld [vmem:[%s2702_s8] sm:$0xff] }
   0x7   :  { %2041 = vmatpush.bf16.msra.mxu2 %v1999_v1  ;;  %2042 = vmatpush.bf16.msra.mxu3 %v1999_v1  ;;  %148 = vst.msk [vmem:[#allocation5] sm:$0xff] %vm95_vm0, %v147_v14  ;;  %v2003_v48 = vld [vmem:[%s2699_s2] sm:$0xff] }
   0x9   :  { %1804 = vmatmul.msk.bf16.vlgmr.msra.gmra.mxu1 %vm95_vm0, %v1996_v4  ;;  %1803 = vmatmul.msk.bf16.vlgmr.msra.gmra.mxu0 %vm95_vm0, %v1995_v5 }
   0xa   :  { %177 = vmatpush.bf16.msrb.mxu1 %v2002_v3  ;;  %v150_v7 = vld [vmem:[#allocation4] sm:$0xff]  ;;  %1805 = vmatmul.msk.bf16.vlgmr.msra.gmra.mxu2 %vm95_vm0, %v1997_v44 }
   0xb   :  { %v151_v8 = vpack.c.bf16 %v150_v7, %v150_v7  ;;  %267 = vmatpush.bf16.msrb.mxu2 %v2004_v45  ;;  %1806 = vmatmul.msk.bf16.vlgmr.msra.gmra.mxu3 %vm95_vm0, %v1998_v23 }
   0xe   :  { %178 = vmatpush.bf16.msrb.mxu1 %v2001_v6  ;;  %v206_v36 = vld [vmem:[#allocation5] sm:$0xff] }
   0xf   :  { %268 = vmatpush.bf16.msrb.mxu2 %v2003_v48 }
  0x19   :  { %1815 = vmatmul.msk.bf16.vlgmr.msrb.gmra.mxu1 %vm95_vm0, %v151_v8 }
  0x86   :  { %v2275_v9 = vpop.f32.mrf.mxu1  ;;  %v117_v12 = vpop.f32.mrf.mxu0 }
  0x87   :  { %v118_v13 = vadd.f32 %v2282_v11, %v117_v12 }
  0x8d   :  { %v2316_v54 = vpop.f32.mrf.mxu2 }
  0x8e   :  { %v2277_v10 = vpop.f32.mrf.mxu1  ;;  %v119_v56 = vpop.f32.mrf.mxu0 }
  0x8f   :  { %v120_v57 = vadd.f32 %v2282_v11, %v119_v56 }
  0x95   :  { %v2318_v55 = vpop.f32.mrf.mxu2 }
  0x96   :  { %v180_v15 = vpop.f32.mrf.mxu1 }
  0x97   :  { %v184_v16 = vadd.f32 %v180_v15, %v118_v13 }
  0x99   :  { %v1816_v17 = vmul.f32 -1.442695, %v184_v16 }
  0x9b   :  { %2049 = vpow2.f32 %v1816_v17 }
  0x9e   :  { %v182_v18 = vpop.f32.mrf.mxu1 }
  0xa1   :  { %v2050_v19 = vpop.eup %2049 }
  0xa2   :  { %v189_v20 = vadd.f32 1.0, %v2050_v19 }
  0xa4   :  { %2051 = vrcp.f32 %v189_v20  ;;  %v201_v26 = vand.u32 2147483648, %v189_v20  ;;  %v199_v28 = vand.u32 2147483647, %v189_v20  ;;  %vm195_vm5 = vweird.f32 %v189_v20 }
  0xa5   :  { %2053 = vtanh.f32 %v184_v16 }
  0xa6   :  { %v202_v31 = vor.u32 1.1754944e-38, %v201_v26  ;;  %vm200_vm7 = vcmp.eq.f32.partialorder %v199_v28, 8.507059e+37  ;;  %v2005_v28 = vld [vmem:[%s2699_s2] sm:$0xff] }
  0xaa   :  { %v2052_v22 = vpop.eup %2051 }
  0xab   :  { %v191_v24 = vmul.f32 %v2052_v22, %v189_v20  ;;  %vm196_vm3 = vweird.f32 %v2052_v22  ;;  %v2054_v33 = vpop.eup %2053 }
  0xac   :  { %vm197_vm6 = vmor %vm195_vm5, %vm196_vm3 }
  0xad   :  { %v192_v25 = vsub.f32 1.0, %v191_v24  ;;  %v2006_v24 = vld [vmem:[%s2699_s2 + $0x8] sm:$0xff] }
  0xae   :  { %357 = vmatpush.bf16.msrb.mxu3 %v2006_v24 }
  0xaf   :  { %v193_v27 = vmul.f32 %v2052_v22, %v192_v25 }
  0xb1   :  { %v194_v30 = vadd.f32 %v2052_v22, %v193_v27 }
  0xb2   :  { %358 = vmatpush.bf16.msrb.mxu3 %v2005_v28 }
  0xb3   :  { %v198_v32 = vsel %vm197_vm6, %v2052_v22, %v194_v30 }
  0xb4   :  { %v203_v34 = vsel %vm200_vm7, %v202_v31, %v198_v32 }
  0xb5   :  { %v205_v35 = vsel %vm2289_vm4, %v2054_v33, %v203_v34  ;;  %v2343_v33 = vpop.f32.mrf.mxu3 }
  0xb6   :  { %213 = vrot.lane.b32.xlu0 %v205_v35, %s2177_s3 }
  0xbd   :  { %v2345_v34 = vpop.f32.mrf.mxu3 }
  0xbe   :  { %208 = vrot.lane.b32.xlu0 %v206_v36, %s2178_s25 }
 0x128   :  { %v214_v37 = vpop.permute.xlu0 %213 }
 0x129   :  { %v216_v38 = vmul.f32 %v214_v37, %v205_v35 }
 0x12b   :  { %218 = vrot.lane.b32.xlu1 %v216_v38, %s2178_s25 }
 0x130   :  { %v209_v39 = vpop.permute.xlu0 %208 }
 0x131   :  { %v211_v40 = vmul.f32 %v209_v39, %v205_v35 }
 0x19d   :  { %v219_v41 = vpop.permute.xlu1 %218 }
 0x19e   :  { %v221_v42 = vadd.f32 %v219_v41, %v211_v40 }
 0x1a0   :  { %2055 = vtanh.f32 %v221_v42 }
 0x1a6   :  { %v2056_v43 = vpop.eup %2055 }
 0x1a7   :  { %224 = vrot.lane.b32.xlu1 %v2056_v43, %s2177_s3 }
 0x219   :  { %v225_v46 = vpop.permute.xlu1 %224 }
 0x21a   :  { %v227_v47 = vmul.f32 %v225_v46, %v205_v35  ;;  %v123_v35 = vadd.f32 %v2282_v11, %v2275_v9 }
 0x21c   :  { %234 = vrot.lane.b32.xlu2 %v227_v47, %s2178_s25 }
 0x224   :  { %229 = vrot.lane.b32.xlu2 %v221_v42, %s2179_s30 }
 0x276   :  { %v235_v49 = vpop.permute.xlu2 %234 }
 0x277   :  { %237 = vst.msk [vmem:[#allocation4] sm:$0xff] %vm95_vm0, %v235_v49 }
 0x278   :  { %238 = vst.msk [vmem:[#allocation2] sm:$0xff] %vm95_vm0, %v235_v49 }
 0x27e   :  { %v230_v50 = vpop.permute.xlu2 %229  ;;  %v240_v51 = vld [vmem:[#allocation4] sm:$0xff] }
 0x27f   :  { %232 = vst.msk [vmem:[#allocation5] sm:$0xff] %vm95_vm0, %v230_v50  ;;  %v241_v52 = vpack.c.bf16 %v240_v51, %v240_v51 }
 0x281   :  { %1825 = vmatmul.msk.bf16.vlgmr.msrb.gmra.mxu2 %vm95_vm0, %v241_v52 }
 0x286   :  { %v296_v53 = vld [vmem:[#allocation5] sm:$0xff] }
 0x287   :  { %298 = vrot.lane.b32.xlu1 %v296_v53, %s2178_s25 }
 0x2f9   :  { %v299_v17 = vpop.permute.xlu1 %298 }
 0x304   :  { %v270_v58 = vpop.f32.mrf.mxu2 }
 0x305   :  { %v274_v59 = vadd.f32 %v270_v58, %v120_v57 }
 0x307   :  { %v1826_v60 = vmul.f32 -1.442695, %v274_v59 }
 0x309   :  { %2057 = vpow2.f32 %v1826_v60 }
 0x30c   :  { %v272_v61 = vpop.f32.mrf.mxu2 }
 0x30f   :  { %v2058_v62 = vpop.eup %2057 }
 0x310   :  { %v279_v63 = vadd.f32 1.0, %v2058_v62 }
 0x312   :  { %2059 = vrcp.f32 %v279_v63  ;;  %v291_v3 = vand.u32 2147483648, %v279_v63  ;;  %v289_v5 = vand.u32 2147483647, %v279_v63  ;;  %vm285_vm9 = vweird.f32 %v279_v63 }
 0x313   :  { %2061 = vtanh.f32 %v274_v59 }
 0x314   :  { %v292_v7 = vor.u32 1.1754944e-38, %v291_v3  ;;  %vm290_vm11 = vcmp.eq.f32.partialorder %v289_v5, 8.507059e+37  ;;  %v2007_v3 = vld [vmem:[%s2699_s2] sm:$0xff] }
 0x318   :  { %v2060_v0 = vpop.eup %2059 }
 0x319   :  { %v281_v1 = vmul.f32 %v2060_v0, %v279_v63  ;;  %vm286_vm8 = vweird.f32 %v2060_v0  ;;  %v2062_v12 = vpop.eup %2061  ;;  %v2008_v63 = vld [vmem:[%s2699_s2 + $0x8] sm:$0xff] }
 0x31a   :  { %vm287_vm10 = vmor %vm285_vm9, %vm286_vm8  ;;  %447 = vmatpush.bf16.msra.mxu1 %v2008_v63 }
 0x31b   :  { %v282_v2 = vsub.f32 1.0, %v281_v1 }
 0x31d   :  { %v283_v4 = vmul.f32 %v2060_v0, %v282_v2 }
 0x31e   :  { %448 = vmatpush.bf16.msra.mxu1 %v2007_v3 }
 0x31f   :  { %v284_v6 = vadd.f32 %v2060_v0, %v283_v4 }
 0x321   :  { %v288_v8 = vsel %vm287_vm10, %v2060_v0, %v284_v6 }
 0x322   :  { %v293_v13 = vsel %vm290_vm11, %v292_v7, %v288_v8  ;;  %v125_v7 = vadd.f32 %v2282_v11, %v2277_v10 }
 0x323   :  { %v295_v14 = vsel %vm2289_vm4, %v2062_v12, %v293_v13 }
 0x324   :  { %303 = vrot.lane.b32.xlu0 %v295_v14, %s2177_s3  ;;  %v301_v18 = vmul.f32 %v299_v17, %v295_v14 }
 0x396   :  { %v304_v15 = vpop.permute.xlu0 %303 }
 0x397   :  { %v306_v16 = vmul.f32 %v304_v15, %v295_v14 }
 0x399   :  { %308 = vrot.lane.b32.xlu2 %v306_v16, %s2178_s25 }
 0x3f3   :  { %v309_v19 = vpop.permute.xlu2 %308 }
 0x3f4   :  { %v311_v20 = vadd.f32 %v309_v19, %v301_v18 }
 0x3f6   :  { %2063 = vtanh.f32 %v311_v20  ;;  %319 = vrot.lane.b32.xlu2 %v311_v20, %s2179_s30 }
 0x3fc   :  { %v2064_v21 = vpop.eup %2063 }
 0x3fd   :  { %314 = vrot.lane.b32.xlu0 %v2064_v21, %s2177_s3 }
 0x450   :  { %v320_v22 = vpop.permute.xlu2 %319 }
 0x451   :  { %322 = vst.msk [vmem:[#allocation5] sm:$0xff] %vm95_vm0, %v320_v22 }
 0x458   :  { %v386_v27 = vld [vmem:[#allocation5] sm:$0xff] }
 0x46f   :  { %v315_v25 = vpop.permute.xlu0 %314 }
 0x470   :  { %v317_v26 = vmul.f32 %v315_v25, %v295_v14 }
 0x472   :  { %324 = vrot.lane.b32.xlu1 %v317_v26, %s2178_s25 }
 0x47a   :  { %388 = vrot.lane.b32.xlu1 %v386_v27, %s2178_s25 }
 0x4e4   :  { %v325_v30 = vpop.permute.xlu1 %324 }
 0x4e5   :  { %327 = vst.msk [vmem:[#allocation4] sm:$0xff] %vm95_vm0, %v325_v30 }
 0x4e6   :  { %328 = vst.msk [vmem:[#allocation2 + $0x8] sm:$0xff] %vm95_vm0, %v325_v30 }
 0x4ec   :  { %v330_v31 = vld [vmem:[#allocation4] sm:$0xff]  ;;  %v389_v57 = vpop.permute.xlu1 %388 }
 0x4ed   :  { %v331_v32 = vpack.c.bf16 %v330_v31, %v330_v31 }
 0x4ef   :  { %1835 = vmatmul.msk.bf16.vlgmr.msrb.gmra.mxu3 %vm95_vm0, %v331_v32 }
 0x572   :  { %v360_v36 = vpop.f32.mrf.mxu3 }
 0x573   :  { %v364_v37 = vadd.f32 %v360_v36, %v123_v35 }
 0x575   :  { %v1836_v38 = vmul.f32 -1.442695, %v364_v37 }
 0x577   :  { %2065 = vpow2.f32 %v1836_v38 }
 0x57a   :  { %v362_v39 = vpop.f32.mrf.mxu3 }
 0x57b   :  { %v2010_v39 = vld [vmem:[%s2699_s2 + $0x8] sm:$0xff] }
 0x57c   :  { %537 = vmatpush.bf16.msra.mxu2 %v2010_v39 }
 0x57d   :  { %v2066_v40 = vpop.eup %2065 }
 0x57e   :  { %v369_v41 = vadd.f32 1.0, %v2066_v40 }
 0x580   :  { %2067 = vrcp.f32 %v369_v41  ;;  %v381_v45 = vand.u32 2147483648, %v369_v41  ;;  %v379_v47 = vand.u32 2147483647, %v369_v41  ;;  %vm375_vm13 = vweird.f32 %v369_v41 }
 0x581   :  { %2069 = vtanh.f32 %v364_v37 }
 0x582   :  { %v382_v9 = vor.u32 1.1754944e-38, %v381_v45  ;;  %vm380_vm15 = vcmp.eq.f32.partialorder %v379_v47, 8.507059e+37  ;;  %v128_v47 = vadd.f32 %v2282_v11, %v2316_v54 }
 0x586   :  { %v2068_v42 = vpop.eup %2067 }
 0x587   :  { %v371_v43 = vmul.f32 %v2068_v42, %v369_v41  ;;  %vm376_vm12 = vweird.f32 %v2068_v42  ;;  %v2070_v50 = vpop.eup %2069 }
 0x588   :  { %vm377_vm14 = vmor %vm375_vm13, %vm376_vm12 }
 0x589   :  { %v372_v44 = vsub.f32 1.0, %v371_v43  ;;  %v2009_v43 = vld [vmem:[%s2699_s2] sm:$0xff] }
 0x58a   :  { %538 = vmatpush.bf16.msra.mxu2 %v2009_v43 }
 0x58b   :  { %v373_v46 = vmul.f32 %v2068_v42, %v372_v44 }
 0x58d   :  { %v374_v48 = vadd.f32 %v2068_v42, %v373_v46 }
 0x58f   :  { %v378_v49 = vsel %vm377_vm14, %v2068_v42, %v374_v48 }
 0x590   :  { %v383_v51 = vsel %vm380_vm15, %v382_v9, %v378_v49 }
 0x591   :  { %v385_v52 = vsel %vm2289_vm4, %v2070_v50, %v383_v51 }
 0x592   :  { %393 = vrot.lane.b32.xlu0 %v385_v52, %s2177_s3  ;;  %v391_v58 = vmul.f32 %v389_v57, %v385_v52 }
 0x604   :  { %v394_v53 = vpop.permute.xlu0 %393 }
 0x605   :  { %v396_v56 = vmul.f32 %v394_v53, %v385_v52 }
 0x607   :  { %398 = vrot.lane.b32.xlu2 %v396_v56, %s2178_s25 }
 0x661   :  { %v399_v59 = vpop.permute.xlu2 %398 }
 0x662   :  { %v401_v60 = vadd.f32 %v399_v59, %v391_v58 }
 0x664   :  { %2071 = vtanh.f32 %v401_v60  ;;  %409 = vrot.lane.b32.xlu2 %v401_v60, %s2179_s30 }
 0x66a   :  { %v2072_v61 = vpop.eup %2071 }
 0x66b   :  { %404 = vrot.lane.b32.xlu0 %v2072_v61, %s2177_s3 }
 0x6be   :  { %v410_v62 = vpop.permute.xlu2 %409 }
 0x6bf   :  { %412 = vst.msk [vmem:[#allocation5] sm:$0xff] %vm95_vm0, %v410_v62 }
 0x6c6   :  { %v476_v2 = vld [vmem:[#allocation5] sm:$0xff] }
 0x6dd   :  { %v405_v0 = vpop.permute.xlu0 %404 }
 0x6de   :  { %v407_v1 = vmul.f32 %v405_v0, %v385_v52 }
 0x6e0   :  { %414 = vrot.lane.b32.xlu1 %v407_v1, %s2178_s25 }
 0x6e8   :  { %478 = vrot.lane.b32.xlu1 %v476_v2, %s2178_s25 }
 0x752   :  { %v415_v4 = vpop.permute.xlu1 %414 }
 0x753   :  { %417 = vst.msk [vmem:[#allocation4] sm:$0xff] %vm95_vm0, %v415_v4 }
 0x754   :  { %418 = vst.msk [vmem:[#allocation2 + $0x10] sm:$0xff] %vm95_vm0, %v415_v4 }
 0x75a   :  { %v420_v5 = vld [vmem:[#allocation4] sm:$0xff]  ;;  %v479_v31 = vpop.permute.xlu1 %478 }
 0x75b   :  { %v421_v6 = vpack.c.bf16 %v420_v5, %v420_v5 }
 0x75d   :  { %1845 = vmatmul.msk.bf16.vlgmr.msra.gmra.mxu1 %vm95_vm0, %v421_v6 }
 0x7da   :  { %v450_v8 = vpop.f32.mrf.mxu1 }
 0x7db   :  { %v454_v12 = vadd.f32 %v450_v8, %v125_v7 }
 0x7dd   :  { %v1846_v13 = vmul.f32 -1.442695, %v454_v12 }
 0x7df   :  { %2073 = vpow2.f32 %v1846_v13  ;;  %v2012_v13 = vld [vmem:[%s2699_s2 + $0x8] sm:$0xff] }
 0x7e0   :  { %627 = vmatpush.bf16.msra.mxu3 %v2012_v13 }
 0x7e2   :  { %v452_v14 = vpop.f32.mrf.mxu1 }
 0x7e5   :  { %v2074_v15 = vpop.eup %2073 }
 0x7e6   :  { %v459_v16 = vadd.f32 1.0, %v2074_v15 }
 0x7e8   :  { %2075 = vrcp.f32 %v459_v16  ;;  %v471_v20 = vand.u32 2147483648, %v459_v16  ;;  %v469_v22 = vand.u32 2147483647, %v459_v16  ;;  %vm465_vm2 = vweird.f32 %v459_v16 }
 0x7e9   :  { %2077 = vtanh.f32 %v454_v12 }
 0x7ea   :  { %v472_v10 = vor.u32 1.1754944e-38, %v471_v20  ;;  %vm470_vm5 = vcmp.eq.f32.partialorder %v469_v22, 8.507059e+37 }
 0x7ee   :  { %v2076_v17 = vpop.eup %2075 }
 0x7ef   :  { %v461_v18 = vmul.f32 %v2076_v17, %v459_v16  ;;  %vm466_vm1 = vweird.f32 %v2076_v17  ;;  %v2078_v25 = vpop.eup %2077 }
 0x7f0   :  { %vm467_vm3 = vmor %vm465_vm2, %vm466_vm1 }
 0x7f1   :  { %v462_v19 = vsub.f32 1.0, %v461_v18  ;;  %v2018_v18 = vld [vmem:[%s2703_s4 + $0x8] sm:$0xff] }
 0x7f3   :  { %v463_v21 = vmul.f32 %v2076_v17, %v462_v19  ;;  %v2017_v19 = vld [vmem:[%s2703_s4] sm:$0xff] }
 0x7f5   :  { %v464_v23 = vadd.f32 %v2076_v17, %v463_v21 }
 0x7f7   :  { %v468_v24 = vsel %vm467_vm3, %v2076_v17, %v464_v23  ;;  %v2011_v17 = vld [vmem:[%s2699_s2] sm:$0xff]  ;;  %v874_v23 = vld [vmem:[#allocation2 + $0x8] sm:$0xff] }
 0x7f8   :  { %v473_v26 = vsel %vm470_vm5, %v472_v10, %v468_v24  ;;  %628 = vmatpush.bf16.msra.mxu3 %v2011_v17  ;;  %v873_v10 = vld [vmem:[#allocation2] sm:$0xff] }
 0x7f9   :  { %v475_v27 = vsel %vm2289_vm4, %v2078_v25, %v473_v26  ;;  %v881_v24 = vpack.c.bf16 %v874_v23, %v873_v10  ;;  %v875_v26 = vld [vmem:[#allocation2 + $0x10] sm:$0xff] }
 0x7fa   :  { %483 = vrot.lane.b32.xlu0 %v475_v27, %s2177_s3  ;;  %v481_v32 = vmul.f32 %v479_v31, %v475_v27 }
 0x7fc   :  { %923 = vmatpush.bf16.msrb.mxu3 %v2018_v18 }
 0x800   :  { %924 = vmatpush.bf16.msrb.mxu3 %v2017_v19 }
 0x86c   :  { %v484_v28 = vpop.permute.xlu0 %483 }
 0x86d   :  { %v486_v30 = vmul.f32 %v484_v28, %v475_v27  ;;  %v130_v28 = vadd.f32 %v2282_v11, %v2318_v55 }
 0x86f   :  { %488 = vrot.lane.b32.xlu2 %v486_v30, %s2178_s25 }
 0x8c9   :  { %v489_v35 = vpop.permute.xlu2 %488 }
 0x8ca   :  { %v491_v36 = vadd.f32 %v489_v35, %v481_v32 }
 0x8cc   :  { %2079 = vtanh.f32 %v491_v36  ;;  %499 = vrot.lane.b32.xlu2 %v491_v36, %s2179_s30 }
 0x8d2   :  { %v2080_v37 = vpop.eup %2079 }
 0x8d3   :  { %494 = vrot.lane.b32.xlu0 %v2080_v37, %s2177_s3 }
 0x926   :  { %v500_v38 = vpop.permute.xlu2 %499 }
 0x927   :  { %502 = vst.msk [vmem:[#allocation5] sm:$0xff] %vm95_vm0, %v500_v38 }
 0x92e   :  { %v566_v42 = vld [vmem:[#allocation5] sm:$0xff] }
 0x945   :  { %v495_v40 = vpop.permute.xlu0 %494 }
 0x946   :  { %v497_v41 = vmul.f32 %v495_v40, %v475_v27 }
 0x948   :  { %504 = vrot.lane.b32.xlu1 %v497_v41, %s2178_s25 }
 0x950   :  { %568 = vrot.lane.b32.xlu1 %v566_v42, %s2178_s25 }
 0x9ba   :  { %v505_v44 = vpop.permute.xlu1 %504 }
 0x9bb   :  { %507 = vst.msk [vmem:[#allocation4] sm:$0xff] %vm95_vm0, %v505_v44 }
 0x9bc   :  { %508 = vst.msk [vmem:[#allocation2 + $0x18] sm:$0xff] %vm95_vm0, %v505_v44 }
 0x9c2   :  { %v510_v45 = vld [vmem:[#allocation4] sm:$0xff]  ;;  %v569_v4 = vpop.permute.xlu1 %568 }
 0x9c3   :  { %v511_v46 = vpack.c.bf16 %v510_v45, %v510_v45  ;;  %v876_v25 = vld [vmem:[#allocation2 + $0x18] sm:$0xff] }
 0x9c4   :  { %v882_v27 = vpack.c.bf16 %v876_v25, %v875_v26 }
 0x9c5   :  { %1855 = vmatmul.msk.bf16.vlgmr.msra.gmra.mxu2 %vm95_vm0, %v511_v46 }
 0xa48   :  { %v540_v48 = vpop.f32.mrf.mxu2 }
 0xa49   :  { %v544_v9 = vadd.f32 %v540_v48, %v128_v47 }
 0xa4b   :  { %v1856_v49 = vmul.f32 -1.442695, %v544_v9 }
 0xa4d   :  { %2081 = vpow2.f32 %v1856_v49 }
 0xa50   :  { %v542_v50 = vpop.f32.mrf.mxu2 }
 0xa53   :  { %v2082_v51 = vpop.eup %2081 }
 0xa54   :  { %v549_v52 = vadd.f32 1.0, %v2082_v51 }
 0xa56   :  { %2083 = vrcp.f32 %v549_v52  ;;  %v561_v58 = vand.u32 2147483648, %v549_v52  ;;  %v559_v60 = vand.u32 2147483647, %v549_v52  ;;  %vm555_vm7 = vweird.f32 %v549_v52 }
 0xa57   :  { %2085 = vtanh.f32 %v544_v9 }
 0xa58   :  { %v562_v54 = vor.u32 1.1754944e-38, %v561_v58  ;;  %vm560_vm9 = vcmp.eq.f32.partialorder %v559_v60, 8.507059e+37  ;;  %v2014_v58 = vld [vmem:[%s2699_s2 + $0x8] sm:$0xff] }
 0xa59   :  { %717 = vmatpush.bf16.msrb.mxu1 %v2014_v58 }
 0xa5c   :  { %v2084_v53 = vpop.eup %2083 }
 0xa5d   :  { %v551_v56 = vmul.f32 %v2084_v53, %v549_v52  ;;  %vm556_vm6 = vweird.f32 %v2084_v53  ;;  %v2086_v63 = vpop.eup %2085 }
 0xa5e   :  { %vm557_vm8 = vmor %vm555_vm7, %vm556_vm6 }
 0xa5f   :  { %v552_v57 = vsub.f32 1.0, %v551_v56 }
 0xa61   :  { %v553_v59 = vmul.f32 %v2084_v53, %v552_v57 }
 0xa63   :  { %v554_v61 = vadd.f32 %v2084_v53, %v553_v59 }
 0xa65   :  { %v558_v62 = vsel %vm557_vm8, %v2084_v53, %v554_v61 }
 0xa66   :  { %v563_v0 = vsel %vm560_vm9, %v562_v54, %v558_v62  ;;  %v2013_v54 = vld [vmem:[%s2699_s2] sm:$0xff] }
 0xa67   :  { %v565_v1 = vsel %vm2289_vm4, %v2086_v63, %v563_v0  ;;  %718 = vmatpush.bf16.msrb.mxu1 %v2013_v54 }
 0xa68   :  { %573 = vrot.lane.b32.xlu0 %v565_v1, %s2177_s3  ;;  %v571_v5 = vmul.f32 %v569_v4, %v565_v1  ;;  %v133_v4 = vadd.f32 %v2282_v11, %v2343_v33 }
 0xada   :  { %v574_v2 = vpop.permute.xlu0 %573 }
 0xadb   :  { %v576_v3 = vmul.f32 %v574_v2, %v565_v1 }
 0xadd   :  { %578 = vrot.lane.b32.xlu2 %v576_v3, %s2178_s25 }
 0xb37   :  { %v579_v6 = vpop.permute.xlu2 %578 }
 0xb38   :  { %v581_v7 = vadd.f32 %v579_v6, %v571_v5 }
 0xb3a   :  { %2087 = vtanh.f32 %v581_v7  ;;  %589 = vrot.lane.b32.xlu2 %v581_v7, %s2179_s30 }
 0xb40   :  { %v2088_v8 = vpop.eup %2087 }
 0xb41   :  { %584 = vrot.lane.b32.xlu0 %v2088_v8, %s2177_s3 }
 0xb94   :  { %v590_v12 = vpop.permute.xlu2 %589 }
 0xb95   :  { %592 = vst.msk [vmem:[#allocation5] sm:$0xff] %vm95_vm0, %v590_v12 }
 0xb9c   :  { %v656_v16 = vld [vmem:[#allocation5] sm:$0xff] }
 0xbb3   :  { %v585_v14 = vpop.permute.xlu0 %584 }
 0xbb4   :  { %v587_v15 = vmul.f32 %v585_v14, %v565_v1 }
 0xbb6   :  { %594 = vrot.lane.b32.xlu1 %v587_v15, %s2178_s25 }
 0xbbe   :  { %658 = vrot.lane.b32.xlu1 %v656_v16, %s2178_s25 }
 0xc28   :  { %v595_v20 = vpop.permute.xlu1 %594 }
 0xc29   :  { %597 = vst.msk [vmem:[#allocation4] sm:$0xff] %vm95_vm0, %v595_v20 }
 0xc2a   :  { %598 = vst.msk [vmem:[#allocation2 + $0x20] sm:$0xff] %vm95_vm0, %v595_v20 }
 0xc30   :  { %v600_v21 = vld [vmem:[#allocation4] sm:$0xff]  ;;  %v659_v50 = vpop.permute.xlu1 %658 }
 0xc31   :  { %v601_v22 = vpack.c.bf16 %v600_v21, %v600_v21  ;;  %v877_v1 = vld [vmem:[#allocation2 + $0x20] sm:$0xff] }
 0xc33   :  { %1865 = vmatmul.msk.bf16.vlgmr.msra.gmra.mxu3 %vm95_vm0, %v601_v22 }
 0xc43   :  { %1895 = vmatmul.msk.bf16.vlgmr.msrb.gmra.mxu3 %vm95_vm0, %v881_v24 }
 0xc53   :  { %1896 = vmatmul.msk.bf16.gmra.mxu3 %vm95_vm0, %v882_v27 }
 0xcb6   :  { %v630_v30 = vpop.f32.mrf.mxu3 }
 0xcb7   :  { %v634_v31 = vadd.f32 %v630_v30, %v130_v28 }
 0xcb9   :  { %v1866_v32 = vmul.f32 -1.442695, %v634_v31 }
 0xcbb   :  { %2089 = vpow2.f32 %v1866_v32 }
 0xcbe   :  { %v632_v35 = vpop.f32.mrf.mxu3 }
 0xcbf   :  { %v2016_v35 = vld [vmem:[%s2699_s2 + $0x8] sm:$0xff] }
 0xcc0   :  { %807 = vmatpush.bf16.msrb.mxu2 %v2016_v35 }
 0xcc1   :  { %v2090_v36 = vpop.eup %2089 }
 0xcc2   :  { %v639_v37 = vadd.f32 1.0, %v2090_v36 }
 0xcc4   :  { %2091 = vrcp.f32 %v639_v37  ;;  %v651_v41 = vand.u32 2147483648, %v639_v37  ;;  %v649_v43 = vand.u32 2147483647, %v639_v37  ;;  %vm645_vm11 = vweird.f32 %v639_v37 }
 0xcc5   :  { %2093 = vtanh.f32 %v634_v31 }
 0xcc6   :  { %v652_v55 = vor.u32 1.1754944e-38, %v651_v41  ;;  %vm650_vm13 = vcmp.eq.f32.partialorder %v649_v43, 8.507059e+37  ;;  %v135_v43 = vadd.f32 %v2282_v11, %v2345_v34 }
 0xcca   :  { %v2092_v38 = vpop.eup %2091 }
 0xccb   :  { %v641_v39 = vmul.f32 %v2092_v38, %v639_v37  ;;  %vm646_vm10 = vweird.f32 %v2092_v38  ;;  %v2094_v46 = vpop.eup %2093 }
 0xccc   :  { %vm647_vm12 = vmor %vm645_vm11, %vm646_vm10 }
 0xccd   :  { %v642_v40 = vsub.f32 1.0, %v641_v39  ;;  %v2015_v39 = vld [vmem:[%s2699_s2] sm:$0xff] }
 0xcce   :  { %808 = vmatpush.bf16.msrb.mxu2 %v2015_v39 }
 0xccf   :  { %v643_v42 = vmul.f32 %v2092_v38, %v642_v40 }
 0xcd1   :  { %v644_v44 = vadd.f32 %v2092_v38, %v643_v42 }
 0xcd3   :  { %v648_v45 = vsel %vm647_vm12, %v2092_v38, %v644_v44 }
 0xcd4   :  { %v653_v47 = vsel %vm650_vm13, %v652_v55, %v648_v45 }
 0xcd5   :  { %v655_v48 = vsel %vm2289_vm4, %v2094_v46, %v653_v47 }
 0xcd6   :  { %663 = vrot.lane.b32.xlu0 %v655_v48, %s2177_s3  ;;  %v661_v51 = vmul.f32 %v659_v50, %v655_v48 }
 0xd48   :  { %v664_v9 = vpop.permute.xlu0 %663 }
 0xd49   :  { %v666_v49 = vmul.f32 %v664_v9, %v655_v48 }
 0xd4b   :  { %668 = vrot.lane.b32.xlu2 %v666_v49, %s2178_s25 }
 0xda5   :  { %v669_v52 = vpop.permute.xlu2 %668 }
 0xda6   :  { %v671_v53 = vadd.f32 %v669_v52, %v661_v51 }
 0xda8   :  { %2095 = vtanh.f32 %v671_v53  ;;  %679 = vrot.lane.b32.xlu2 %v671_v53, %s2179_s30 }
 0xdae   :  { %v2096_v56 = vpop.eup %2095 }
 0xdaf   :  { %674 = vrot.lane.b32.xlu0 %v2096_v56, %s2177_s3 }
 0xe02   :  { %v680_v57 = vpop.permute.xlu2 %679 }
 0xe03   :  { %682 = vst.msk [vmem:[#allocation5] sm:$0xff] %vm95_vm0, %v680_v57 }
 0xe0a   :  { %v746_v61 = vld [vmem:[#allocation5] sm:$0xff] }
 0xe21   :  { %v675_v59 = vpop.permute.xlu0 %674 }
 0xe22   :  { %v677_v60 = vmul.f32 %v675_v59, %v655_v48 }
 0xe24   :  { %684 = vrot.lane.b32.xlu1 %v677_v60, %s2178_s25 }
 0xe2c   :  { %748 = vrot.lane.b32.xlu1 %v746_v61, %s2178_s25 }
 0xe96   :  { %v685_v62 = vpop.permute.xlu1 %684 }
 0xe97   :  { %687 = vst.msk [vmem:[#allocation4] sm:$0xff] %vm95_vm0, %v685_v62 }
 0xe98   :  { %688 = vst.msk [vmem:[#allocation2 + $0x28] sm:$0xff] %vm95_vm0, %v685_v62 }
 0xe9e   :  { %v690_v63 = vld [vmem:[#allocation4] sm:$0xff]  ;;  %v749_v26 = vpop.permute.xlu1 %748 }
 0xe9f   :  { %v691_v0 = vpack.c.bf16 %v690_v63, %v690_v63  ;;  %v878_v2 = vld [vmem:[#allocation2 + $0x28] sm:$0xff] }
 0xea0   :  { %v883_v3 = vpack.c.bf16 %v878_v2, %v877_v1 }
 0xea1   :  { %1875 = vmatmul.msk.bf16.vlgmr.msrb.gmra.mxu1 %vm95_vm0, %v691_v0 }
 0xea2   :  { %1897 = vmatmul.msk.bf16.gmra.mxu3 %vm95_vm0, %v883_v3  ;;  %v1900_v3 = vld [vmem:[%s2702_s8 + $0x8] sm:$0xff] }
 0xf1e   :  { %v720_v5 = vpop.f32.mrf.mxu1 }
 0xf1f   :  { %v724_v6 = vadd.f32 %v720_v5, %v133_v4 }
 0xf21   :  { %v1876_v7 = vmul.f32 -1.442695, %v724_v6 }
 0xf23   :  { %2097 = vpow2.f32 %v1876_v7  ;;  %v2020_v7 = vld [vmem:[%s2706_s5 + $0x8] sm:$0xff] }
 0xf24   :  { %988 = vmatpush.bf16.msra.mxu1 %v2020_v7 }
 0xf26   :  { %v722_v8 = vpop.f32.mrf.mxu1 }
 0xf27   :  { %v2019_v8 = vld [vmem:[%s2706_s5] sm:$0xff] }
 0xf28   :  { %989 = vmatpush.bf16.msra.mxu1 %v2019_v8 }
 0xf29   :  { %v2098_v12 = vpop.eup %2097 }
 0xf2a   :  { %v729_v13 = vadd.f32 1.0, %v2098_v12 }
 0xf2c   :  { %2099 = vrcp.f32 %v729_v13  ;;  %v741_v17 = vand.u32 2147483648, %v729_v13  ;;  %v739_v19 = vand.u32 2147483647, %v729_v13  ;;  %vm735_vm15 = vweird.f32 %v729_v13 }
 0xf2d   :  { %2101 = vtanh.f32 %v724_v6 }
 0xf2e   :  { %v742_v33 = vor.u32 1.1754944e-38, %v741_v17  ;;  %vm740_vm2 = vcmp.eq.f32.partialorder %v739_v19, 8.507059e+37 }
 0xf32   :  { %v2100_v14 = vpop.eup %2099 }
 0xf33   :  { %v731_v15 = vmul.f32 %v2100_v14, %v729_v13  ;;  %vm736_vm14 = vweird.f32 %v2100_v14  ;;  %v2102_v22 = vpop.eup %2101 }
 0xf34   :  { %vm737_vm1 = vmor %vm735_vm15, %vm736_vm14 }
 0xf35   :  { %v732_v16 = vsub.f32 1.0, %v731_v15 }
 0xf37   :  { %v733_v18 = vmul.f32 %v2100_v14, %v732_v16 }
 0xf39   :  { %v734_v20 = vadd.f32 %v2100_v14, %v733_v18 }
 0xf3b   :  { %v738_v21 = vsel %vm737_vm1, %v2100_v14, %v734_v20  ;;  %v1899_v14 = vld [vmem:[%s2698_s7 + $0x8] sm:$0xff] }
 0xf3c   :  { %v743_v23 = vsel %vm740_vm2, %v742_v33, %v738_v21  ;;  %v2496_v33 = vld [vmem:[%s2704_s6] ss:$0 sm:$0xff]  ;;  %v926_v21 = vpop.f32.mrf.mxu3 }
 0xf3d   :  { %v745_v10 = vsel %vm2289_vm4, %v2102_v22, %v743_v23  ;;  %v927_v22 = vadd.f32 %v2496_v33, %v926_v21 }
 0xf3e   :  { %753 = vrot.lane.b32.xlu0 %v745_v10, %s2177_s3  ;;  %v751_v27 = vmul.f32 %v749_v26, %v745_v10 }
 0xfb0   :  { %v754_v24 = vpop.permute.xlu0 %753 }
 0xfb1   :  { %v756_v25 = vmul.f32 %v754_v24, %v745_v10 }
 0xfb3   :  { %758 = vrot.lane.b32.xlu2 %v756_v25, %s2178_s25 }
0x100d   :  { %v759_v28 = vpop.permute.xlu2 %758 }
0x100e   :  { %v761_v30 = vadd.f32 %v759_v28, %v751_v27 }
0x1010   :  { %2103 = vtanh.f32 %v761_v30  ;;  %769 = vrot.lane.b32.xlu2 %v761_v30, %s2179_s30 }
0x1016   :  { %v2104_v31 = vpop.eup %2103 }
0x1017   :  { %764 = vrot.lane.b32.xlu0 %v2104_v31, %s2177_s3 }
0x106a   :  { %v770_v32 = vpop.permute.xlu2 %769 }
0x106b   :  { %772 = vst.msk [vmem:[#allocation5] sm:$0xff] %vm95_vm0, %v770_v32 }
0x1072   :  { %v836_v38 = vld [vmem:[#allocation5] sm:$0xff] }
0x1089   :  { %v765_v36 = vpop.permute.xlu0 %764 }
0x108a   :  { %v767_v37 = vmul.f32 %v765_v36, %v745_v10 }
0x108c   :  { %774 = vrot.lane.b32.xlu1 %v767_v37, %s2178_s25 }
0x1094   :  { %838 = vrot.lane.b32.xlu1 %v836_v38, %s2178_s25 }
0x10fe   :  { %v775_v40 = vpop.permute.xlu1 %774 }
0x10ff   :  { %777 = vst.msk [vmem:[#allocation4] sm:$0xff] %vm95_vm0, %v775_v40 }
0x1100   :  { %778 = vst.msk [vmem:[#allocation2 + $0x30] sm:$0xff] %vm95_vm0, %v775_v40 }
0x1106   :  { %v780_v41 = vld [vmem:[#allocation4] sm:$0xff]  ;;  %v839_v54 = vpop.permute.xlu1 %838 }
0x1107   :  { %v781_v42 = vpack.c.bf16 %v780_v41, %v780_v41  ;;  %v879_v16 = vld [vmem:[#allocation2 + $0x30] sm:$0xff] }
0x1109   :  { %1885 = vmatmul.msk.bf16.vlgmr.msrb.gmra.mxu2 %vm95_vm0, %v781_v42 }
0x118c   :  { %v810_v44 = vpop.f32.mrf.mxu2 }
0x118d   :  { %v814_v55 = vadd.f32 %v810_v44, %v135_v43 }
0x118f   :  { %v1886_v45 = vmul.f32 -1.442695, %v814_v55 }
0x1191   :  { %2105 = vpow2.f32 %v1886_v45 }
0x1194   :  { %v812_v46 = vpop.f32.mrf.mxu2 }
0x1197   :  { %v2106_v47 = vpop.eup %2105 }
0x1198   :  { %v819_v48 = vadd.f32 1.0, %v2106_v47 }
0x119a   :  { %2107 = vrcp.f32 %v819_v48  ;;  %v831_v51 = vand.u32 2147483648, %v819_v48  ;;  %v829_v53 = vand.u32 2147483647, %v819_v48  ;;  %vm825_vm5 = vweird.f32 %v819_v48 }
0x119b   :  { %2109 = vtanh.f32 %v814_v55 }
0x119c   :  { %v832_v11 = vor.u32 1.1754944e-38, %v831_v51  ;;  %vm830_vm7 = vcmp.eq.f32.partialorder %v829_v53, 8.507059e+37  ;;  %v2021_v53 = vld [vmem:[%s2706_s5] sm:$0xff] }
0x11a0   :  { %v2108_v9 = vpop.eup %2107 }
0x11a1   :  { %v821_v49 = vmul.f32 %v2108_v9, %v819_v48  ;;  %vm826_vm3 = vweird.f32 %v2108_v9  ;;  %v2110_v57 = vpop.eup %2109 }
0x11a2   :  { %vm827_vm6 = vmor %vm825_vm5, %vm826_vm3 }
0x11a3   :  { %v822_v50 = vsub.f32 1.0, %v821_v49  ;;  %v2022_v49 = vld [vmem:[%s2706_s5 + $0x8] sm:$0xff] }
0x11a4   :  { %1078 = vmatpush.bf16.msra.mxu2 %v2022_v49 }
0x11a5   :  { %v823_v52 = vmul.f32 %v2108_v9, %v822_v50 }
0x11a7   :  { %v824_v56 = vadd.f32 %v2108_v9, %v823_v52 }
0x11a8   :  { %1079 = vmatpush.bf16.msra.mxu2 %v2021_v53 }
0x11a9   :  { %v828_v34 = vsel %vm827_vm6, %v2108_v9, %v824_v56 }
0x11aa   :  { %v833_v58 = vsel %vm830_vm7, %v832_v11, %v828_v34 }
0x11ab   :  { %v835_v59 = vsel %vm2289_vm4, %v2110_v57, %v833_v58  ;;  %v928_v57 = vpop.f32.mrf.mxu3 }
0x11ac   :  { %843 = vrot.lane.b32.xlu0 %v835_v59, %s2177_s3  ;;  %v841_v62 = vmul.f32 %v839_v54, %v835_v59  ;;  %v929_v58 = vadd.f32 %v2496_v33, %v928_v57 }
0x121e   :  { %v844_v60 = vpop.permute.xlu0 %843 }
0x121f   :  { %v846_v61 = vmul.f32 %v844_v60, %v835_v59 }
0x1221   :  { %848 = vrot.lane.b32.xlu2 %v846_v61, %s2178_s25 }
0x127b   :  { %v849_v63 = vpop.permute.xlu2 %848 }
0x127c   :  { %v851_v0 = vadd.f32 %v849_v63, %v841_v62 }
0x127e   :  { %2111 = vtanh.f32 %v851_v0  ;;  %859 = vrot.lane.b32.xlu2 %v851_v0, %s2179_s30 }
0x1284   :  { %v2112_v1 = vpop.eup %2111 }
0x1285   :  { %854 = vrot.lane.b32.xlu0 %v2112_v1, %s2177_s3 }
0x12d8   :  { %v860_v2 = vpop.permute.xlu2 %859 }
0x12d9   :  { %862 = vst.msk [vmem:[#allocation5] sm:$0xff] %vm95_vm0, %v860_v2 }
0x12e0   :  { %v871_v4 = vld [vmem:[#allocation5] sm:$0xff] }
0x12e1   :  { %872 = vst.msk [vmem:[%s2705_s13] sm:$0xff] %vm95_vm0, %v871_v4 }
0x12e2   :  { %959 = vst.msk [vmem:[#allocation5] sm:$0xff] %vm95_vm0, %v1900_v3 }
0x12e9   :  { %v1017_v12 = vld [vmem:[#allocation5] sm:$0xff] }
0x12f7   :  { %v855_v5 = vpop.permute.xlu0 %854 }
0x12f8   :  { %v857_v6 = vmul.f32 %v855_v5, %v835_v59 }
0x12fa   :  { %864 = vrot.lane.b32.xlu1 %v857_v6, %s2178_s25 }
0x1302   :  { %1019 = vrot.lane.b32.xlu1 %v1017_v12, %s2178_s25 }
0x136c   :  { %v865_v13 = vpop.permute.xlu1 %864 }
0x136d   :  { %867 = vst.msk [vmem:[#allocation4] sm:$0xff] %vm95_vm0, %v865_v13 }
0x136e   :  { %868 = vst.msk [vmem:[#allocation2 + $0x38] sm:$0xff] %vm95_vm0, %v865_v13 }
0x1374   :  { %v869_v15 = vld [vmem:[#allocation4] sm:$0xff]  ;;  %v1020_v55 = vpop.permute.xlu1 %1019 }
0x1375   :  { %870 = vst.msk [vmem:[%s2707_s12] sm:$0xff] %vm95_vm0, %v869_v15  ;;  %v880_v17 = vld [vmem:[#allocation2 + $0x38] sm:$0xff] }
0x1376   :  { %956 = vst.msk [vmem:[#allocation4] sm:$0xff] %vm95_vm0, %v1899_v14  ;;  %v884_v18 = vpack.c.bf16 %v880_v17, %v879_v16 }
0x1378   :  { %1898 = vmatmul.msk.bf16.gmra.mxu3 %vm95_vm0, %v884_v18 }
0x137d   :  { %v961_v19 = vld [vmem:[#allocation4] sm:$0xff] }
0x137e   :  { %v962_v20 = vpack.c.bf16 %v961_v19, %v961_v19 }
0x1380   :  { %1909 = vmatmul.msk.bf16.vlgmr.msra.gmra.mxu1 %vm95_vm0, %v962_v20 }
0x13fd   :  { %v991_v23 = vpop.f32.mrf.mxu1 }
0x13fe   :  { %v995_v10 = vadd.f32 %v991_v23, %v927_v22  ;;  %v2024_v23 = vld [vmem:[%s2706_s5 + $0x8] sm:$0xff] }
0x13ff   :  { %1168 = vmatpush.bf16.msrb.mxu0 %v2024_v23 }
0x1400   :  { %v1910_v24 = vmul.f32 -1.442695, %v995_v10 }
0x1402   :  { %2113 = vpow2.f32 %v1910_v24 }
0x1405   :  { %v993_v25 = vpop.f32.mrf.mxu1 }
0x1408   :  { %v2114_v26 = vpop.eup %2113 }
0x1409   :  { %v1000_v27 = vadd.f32 1.0, %v2114_v26  ;;  %v2023_v26 = vld [vmem:[%s2706_s5] sm:$0xff] }
0x140a   :  { %1169 = vmatpush.bf16.msrb.mxu0 %v2023_v26 }
0x140b   :  { %2115 = vrcp.f32 %v1000_v27  ;;  %v1012_v32 = vand.u32 2147483648, %v1000_v27  ;;  %v1010_v36 = vand.u32 2147483647, %v1000_v27  ;;  %vm1006_vm9 = vweird.f32 %v1000_v27 }
0x140c   :  { %2117 = vtanh.f32 %v995_v10 }
0x140d   :  { %v1013_v38 = vor.u32 1.1754944e-38, %v1012_v32  ;;  %vm1011_vm11 = vcmp.eq.f32.partialorder %v1010_v36, 8.507059e+37 }
0x1411   :  { %v2116_v28 = vpop.eup %2115 }
0x1412   :  { %v1002_v30 = vmul.f32 %v2116_v28, %v1000_v27  ;;  %vm1007_vm8 = vweird.f32 %v2116_v28  ;;  %v2118_v40 = vpop.eup %2117 }
0x1413   :  { %vm1008_vm10 = vmor %vm1006_vm9, %vm1007_vm8 }
0x1414   :  { %v1003_v31 = vsub.f32 1.0, %v1002_v30 }
0x1416   :  { %v1004_v35 = vmul.f32 %v2116_v28, %v1003_v31  ;;  %v931_v31 = vpop.f32.mrf.mxu3 }
0x1417   :  { %v932_v32 = vadd.f32 %v2496_v33, %v931_v31 }
0x1418   :  { %v1005_v37 = vadd.f32 %v2116_v28, %v1004_v35 }
0x141a   :  { %v1009_v39 = vsel %vm1008_vm10, %v2116_v28, %v1005_v37 }
0x141b   :  { %v1014_v41 = vsel %vm1011_vm11, %v1013_v38, %v1009_v39 }
0x141c   :  { %v1016_v42 = vsel %vm2289_vm4, %v2118_v40, %v1014_v41 }
0x141d   :  { %1024 = vrot.lane.b32.xlu0 %v1016_v42, %s2177_s3  ;;  %v1022_v45 = vmul.f32 %v1020_v55, %v1016_v42 }
0x148f   :  { %v1025_v43 = vpop.permute.xlu0 %1024 }
0x1490   :  { %v1027_v44 = vmul.f32 %v1025_v43, %v1016_v42 }
0x1492   :  { %1029 = vrot.lane.b32.xlu2 %v1027_v44, %s2178_s25 }
0x14ec   :  { %v1030_v46 = vpop.permute.xlu2 %1029 }
0x14ed   :  { %v1032_v47 = vadd.f32 %v1030_v46, %v1022_v45 }
0x14ef   :  { %2119 = vtanh.f32 %v1032_v47  ;;  %1040 = vrot.lane.b32.xlu2 %v1032_v47, %s2179_s30 }
0x14f5   :  { %v2120_v48 = vpop.eup %2119 }
0x14f6   :  { %1035 = vrot.lane.b32.xlu0 %v2120_v48, %s2177_s3 }
0x1549   :  { %v1041_v9 = vpop.permute.xlu2 %1040 }
0x154a   :  { %1043 = vst.msk [vmem:[#allocation5] sm:$0xff] %vm95_vm0, %v1041_v9 }
0x1551   :  { %v1107_v52 = vld [vmem:[#allocation5] sm:$0xff] }
0x1568   :  { %v1036_v50 = vpop.permute.xlu0 %1035 }
0x1569   :  { %v1038_v51 = vmul.f32 %v1036_v50, %v1016_v42 }
0x156b   :  { %1045 = vrot.lane.b32.xlu1 %v1038_v51, %s2178_s25 }
0x1573   :  { %1109 = vrot.lane.b32.xlu1 %v1107_v52, %s2178_s25 }
0x15dd   :  { %v1046_v56 = vpop.permute.xlu1 %1045 }
0x15de   :  { %1048 = vst.msk [vmem:[#allocation4] sm:$0xff] %vm95_vm0, %v1046_v56 }
0x15df   :  { %1049 = vst.msk [vmem:[#allocation2] sm:$0xff] %vm95_vm0, %v1046_v56 }
0x15e5   :  { %v1051_v11 = vld [vmem:[#allocation4] sm:$0xff]  ;;  %v1110_v17 = vpop.permute.xlu1 %1109 }
0x15e6   :  { %v1052_v34 = vpack.c.bf16 %v1051_v11, %v1051_v11 }
0x15e8   :  { %1919 = vmatmul.msk.bf16.vlgmr.msra.gmra.mxu2 %vm95_vm0, %v1052_v34 }
0x166b   :  { %v1081_v59 = vpop.f32.mrf.mxu2 }
0x166c   :  { %v1085_v60 = vadd.f32 %v1081_v59, %v929_v58  ;;  %v2026_v59 = vld [vmem:[%s2706_s5 + $0x8] sm:$0xff] }
0x166d   :  { %1258 = vmatpush.bf16.msrb.mxu1 %v2026_v59 }
0x166e   :  { %v1920_v61 = vmul.f32 -1.442695, %v1085_v60 }
0x1670   :  { %2121 = vpow2.f32 %v1920_v61 }
0x1673   :  { %v1083_v54 = vpop.f32.mrf.mxu2 }
0x1676   :  { %v2122_v62 = vpop.eup %2121 }
0x1677   :  { %v1090_v63 = vadd.f32 1.0, %v2122_v62  ;;  %v2025_v62 = vld [vmem:[%s2706_s5] sm:$0xff] }
0x1678   :  { %1259 = vmatpush.bf16.msrb.mxu1 %v2025_v62 }
0x1679   :  { %2123 = vrcp.f32 %v1090_v63  ;;  %v1102_v3 = vand.u32 2147483648, %v1090_v63  ;;  %v1100_v5 = vand.u32 2147483647, %v1090_v63  ;;  %vm1096_vm13 = vweird.f32 %v1090_v63 }
0x167a   :  { %2125 = vtanh.f32 %v1085_v60 }
0x167b   :  { %v1103_v7 = vor.u32 1.1754944e-38, %v1102_v3  ;;  %vm1101_vm15 = vcmp.eq.f32.partialorder %v1100_v5, 8.507059e+37 }
0x167f   :  { %v2124_v0 = vpop.eup %2123 }
0x1680   :  { %v1092_v1 = vmul.f32 %v2124_v0, %v1090_v63  ;;  %vm1097_vm12 = vweird.f32 %v2124_v0  ;;  %v2126_v12 = vpop.eup %2125 }
0x1681   :  { %vm1098_vm14 = vmor %vm1096_vm13, %vm1097_vm12 }
0x1682   :  { %v1093_v2 = vsub.f32 1.0, %v1092_v1 }
0x1684   :  { %v1094_v4 = vmul.f32 %v2124_v0, %v1093_v2  ;;  %v933_v2 = vpop.f32.mrf.mxu3 }
0x1685   :  { %v934_v3 = vadd.f32 %v2496_v33, %v933_v2 }
0x1686   :  { %v1095_v6 = vadd.f32 %v2124_v0, %v1094_v4 }
0x1688   :  { %v1099_v8 = vsel %vm1098_vm14, %v2124_v0, %v1095_v6 }
0x1689   :  { %v1104_v13 = vsel %vm1101_vm15, %v1103_v7, %v1099_v8 }
0x168a   :  { %v1106_v14 = vsel %vm2289_vm4, %v2126_v12, %v1104_v13 }
0x168b   :  { %1114 = vrot.lane.b32.xlu0 %v1106_v14, %s2177_s3  ;;  %v1112_v18 = vmul.f32 %v1110_v17, %v1106_v14 }
0x16fd   :  { %v1115_v15 = vpop.permute.xlu0 %1114 }
0x16fe   :  { %v1117_v16 = vmul.f32 %v1115_v15, %v1106_v14 }
0x1700   :  { %1119 = vrot.lane.b32.xlu2 %v1117_v16, %s2178_s25 }
0x175a   :  { %v1120_v19 = vpop.permute.xlu2 %1119 }
0x175b   :  { %v1122_v20 = vadd.f32 %v1120_v19, %v1112_v18 }
0x175d   :  { %2127 = vtanh.f32 %v1122_v20  ;;  %1130 = vrot.lane.b32.xlu2 %v1122_v20, %s2179_s30 }
0x1763   :  { %v2128_v21 = vpop.eup %2127 }
0x1764   :  { %1125 = vrot.lane.b32.xlu0 %v2128_v21, %s2177_s3 }
0x17b7   :  { %v1131_v22 = vpop.permute.xlu2 %1130 }
0x17b8   :  { %1133 = vst.msk [vmem:[#allocation5] sm:$0xff] %vm95_vm0, %v1131_v22 }
0x17bf   :  { %v1197_v25 = vld [vmem:[#allocation5] sm:$0xff] }
0x17d6   :  { %v1126_v10 = vpop.permute.xlu0 %1125 }
0x17d7   :  { %v1128_v24 = vmul.f32 %v1126_v10, %v1106_v14 }
0x17d9   :  { %1135 = vrot.lane.b32.xlu1 %v1128_v24, %s2178_s25 }
0x17e1   :  { %1199 = vrot.lane.b32.xlu1 %v1197_v25, %s2178_s25 }
0x184b   :  { %v1136_v27 = vpop.permute.xlu1 %1135 }
0x184c   :  { %1138 = vst.msk [vmem:[#allocation4] sm:$0xff] %vm95_vm0, %v1136_v27 }
0x184d   :  { %1139 = vst.msk [vmem:[#allocation2 + $0x8] sm:$0xff] %vm95_vm0, %v1136_v27 }
0x1853   :  { %v1141_v28 = vld [vmem:[#allocation4] sm:$0xff]  ;;  %v1200_v53 = vpop.permute.xlu1 %1199 }
0x1854   :  { %v1142_v30 = vpack.c.bf16 %v1141_v28, %v1141_v28 }
0x1856   :  { %1929 = vmatmul.msk.bf16.vlgmr.msrb.gmra.mxu0 %vm95_vm0, %v1142_v30 }
0x18d3   :  { %v1171_v35 = vpop.f32.mrf.mxu0 }
0x18d4   :  { %v1175_v36 = vadd.f32 %v1171_v35, %v932_v32  ;;  %v2028_v35 = vld [vmem:[%s2706_s5 + $0x8] sm:$0xff] }
0x18d5   :  { %1348 = vmatpush.bf16.msrb.mxu2 %v2028_v35 }
0x18d6   :  { %v1930_v37 = vmul.f32 -1.442695, %v1175_v36 }
0x18d8   :  { %2129 = vpow2.f32 %v1930_v37 }
0x18db   :  { %v1173_v38 = vpop.f32.mrf.mxu0 }
0x18de   :  { %v2130_v39 = vpop.eup %2129 }
0x18df   :  { %v1180_v40 = vadd.f32 1.0, %v2130_v39  ;;  %v2027_v39 = vld [vmem:[%s2706_s5] sm:$0xff] }
0x18e0   :  { %1349 = vmatpush.bf16.msrb.mxu2 %v2027_v39 }
0x18e1   :  { %2131 = vrcp.f32 %v1180_v40  ;;  %v1192_v44 = vand.u32 2147483648, %v1180_v40  ;;  %v1190_v45 = vand.u32 2147483647, %v1180_v40  ;;  %vm1186_vm2 = vweird.f32 %v1180_v40 }
0x18e2   :  { %2133 = vtanh.f32 %v1175_v36 }
0x18e3   :  { %v1193_v47 = vor.u32 1.1754944e-38, %v1192_v44  ;;  %vm1191_vm5 = vcmp.eq.f32.partialorder %v1190_v45, 8.507059e+37 }
0x18e7   :  { %v2132_v41 = vpop.eup %2131 }
0x18e8   :  { %v1182_v42 = vmul.f32 %v2132_v41, %v1180_v40  ;;  %vm1187_vm1 = vweird.f32 %v2132_v41  ;;  %v2134_v9 = vpop.eup %2133 }
0x18e9   :  { %vm1188_vm3 = vmor %vm1186_vm2, %vm1187_vm1 }
0x18ea   :  { %v1183_v43 = vsub.f32 1.0, %v1182_v42 }
0x18ec   :  { %v1184_v55 = vmul.f32 %v2132_v41, %v1183_v43  ;;  %v936_v43 = vpop.f32.mrf.mxu3 }
0x18ed   :  { %v937_v44 = vadd.f32 %v2496_v33, %v936_v43 }
0x18ee   :  { %v1185_v46 = vadd.f32 %v2132_v41, %v1184_v55 }
0x18f0   :  { %v1189_v48 = vsel %vm1188_vm3, %v2132_v41, %v1185_v46 }
0x18f1   :  { %v1194_v49 = vsel %vm1191_vm5, %v1193_v47, %v1189_v48 }
0x18f2   :  { %v1196_v50 = vsel %vm2289_vm4, %v2134_v9, %v1194_v49 }
0x18f3   :  { %1204 = vrot.lane.b32.xlu0 %v1196_v50, %s2177_s3  ;;  %v1202_v56 = vmul.f32 %v1200_v53, %v1196_v50 }
0x1965   :  { %v1205_v51 = vpop.permute.xlu0 %1204 }
0x1966   :  { %v1207_v52 = vmul.f32 %v1205_v51, %v1196_v50 }
0x1968   :  { %1209 = vrot.lane.b32.xlu2 %v1207_v52, %s2178_s25 }
0x19c2   :  { %v1210_v11 = vpop.permute.xlu2 %1209 }
0x19c3   :  { %v1212_v34 = vadd.f32 %v1210_v11, %v1202_v56 }
0x19c5   :  { %2135 = vtanh.f32 %v1212_v34  ;;  %1220 = vrot.lane.b32.xlu2 %v1212_v34, %s2179_s30 }
0x19cb   :  { %v2136_v57 = vpop.eup %2135 }
0x19cc   :  { %1215 = vrot.lane.b32.xlu0 %v2136_v57, %s2177_s3 }
0x1a1f   :  { %v1221_v58 = vpop.permute.xlu2 %1220 }
0x1a20   :  { %1223 = vst.msk [vmem:[#allocation5] sm:$0xff] %vm95_vm0, %v1221_v58 }
0x1a27   :  { %v1287_v54 = vld [vmem:[#allocation5] sm:$0xff] }
0x1a3e   :  { %v1216_v60 = vpop.permute.xlu0 %1215 }
0x1a3f   :  { %v1218_v61 = vmul.f32 %v1216_v60, %v1196_v50 }
0x1a41   :  { %1225 = vrot.lane.b32.xlu1 %v1218_v61, %s2178_s25 }
0x1a49   :  { %1289 = vrot.lane.b32.xlu1 %v1287_v54, %s2178_s25 }
0x1ab3   :  { %v1226_v63 = vpop.permute.xlu1 %1225 }
0x1ab4   :  { %1228 = vst.msk [vmem:[#allocation4] sm:$0xff] %vm95_vm0, %v1226_v63 }
0x1ab5   :  { %1229 = vst.msk [vmem:[#allocation2 + $0x10] sm:$0xff] %vm95_vm0, %v1226_v63 }
0x1abb   :  { %v1231_v0 = vld [vmem:[#allocation4] sm:$0xff]  ;;  %v1290_v26 = vpop.permute.xlu1 %1289 }
0x1abc   :  { %v1232_v1 = vpack.c.bf16 %v1231_v0, %v1231_v0 }
0x1abe   :  { %1939 = vmatmul.msk.bf16.vlgmr.msrb.gmra.mxu1 %vm95_vm0, %v1232_v1 }
0x1b3b   :  { %v1261_v4 = vpop.f32.mrf.mxu1 }
0x1b3c   :  { %v1265_v5 = vadd.f32 %v1261_v4, %v934_v3  ;;  %v2030_v4 = vld [vmem:[%s2706_s5 + $0x8] sm:$0xff] }
0x1b3d   :  { %1438 = vmatpush.bf16.msra.mxu0 %v2030_v4 }
0x1b3e   :  { %v1940_v6 = vmul.f32 -1.442695, %v1265_v5 }
0x1b40   :  { %2137 = vpow2.f32 %v1940_v6 }
0x1b43   :  { %v1263_v7 = vpop.f32.mrf.mxu1 }
0x1b46   :  { %v2138_v8 = vpop.eup %2137 }
0x1b47   :  { %v1270_v12 = vadd.f32 1.0, %v2138_v8  ;;  %v2029_v8 = vld [vmem:[%s2706_s5] sm:$0xff] }
0x1b48   :  { %1439 = vmatpush.bf16.msra.mxu0 %v2029_v8 }
0x1b49   :  { %2139 = vrcp.f32 %v1270_v12  ;;  %v1282_v16 = vand.u32 2147483648, %v1270_v12  ;;  %v1280_v18 = vand.u32 2147483647, %v1270_v12  ;;  %vm1276_vm7 = vweird.f32 %v1270_v12 }
0x1b4a   :  { %2141 = vtanh.f32 %v1265_v5 }
0x1b4b   :  { %v1283_v20 = vor.u32 1.1754944e-38, %v1282_v16  ;;  %vm1281_vm9 = vcmp.eq.f32.partialorder %v1280_v18, 8.507059e+37  ;;  %v1686_v18 = vld [vmem:[#allocation2] sm:$0xff] }
0x1b4f   :  { %v2140_v13 = vpop.eup %2139 }
0x1b50   :  { %v1272_v14 = vmul.f32 %v2140_v13, %v1270_v12  ;;  %vm1277_vm6 = vweird.f32 %v2140_v13  ;;  %v2142_v22 = vpop.eup %2141  ;;  %v2036_v12 = vld [vmem:[%s2708_s9 + $0x8] sm:$0xff] }
0x1b51   :  { %vm1278_vm8 = vmor %vm1276_vm7, %vm1277_vm6  ;;  %1736 = vmatpush.bf16.msrb.mxu0 %v2036_v12 }
0x1b52   :  { %v1273_v15 = vsub.f32 1.0, %v1272_v14 }
0x1b54   :  { %v1274_v17 = vmul.f32 %v2140_v13, %v1273_v15 }
0x1b56   :  { %v1275_v19 = vadd.f32 %v2140_v13, %v1274_v17  ;;  %v1687_v17 = vld [vmem:[#allocation2 + $0x8] sm:$0xff] }
0x1b58   :  { %v1279_v21 = vsel %vm1278_vm8, %v2140_v13, %v1275_v19  ;;  %v2035_v13 = vld [vmem:[%s2708_s9] sm:$0xff]  ;;  %v1694_v19 = vpack.c.bf16 %v1687_v17, %v1686_v18 }
0x1b59   :  { %v1284_v23 = vsel %vm1281_vm9, %v1283_v20, %v1279_v21  ;;  %1737 = vmatpush.bf16.msrb.mxu0 %v2035_v13  ;;  %v1688_v21 = vld [vmem:[#allocation2 + $0x10] sm:$0xff] }
0x1b5a   :  { %v1286_v10 = vsel %vm2289_vm4, %v2142_v22, %v1284_v23  ;;  %v938_v23 = vpop.f32.mrf.mxu3 }
0x1b5b   :  { %1294 = vrot.lane.b32.xlu0 %v1286_v10, %s2177_s3  ;;  %v1292_v27 = vmul.f32 %v1290_v26, %v1286_v10 }
0x1bcd   :  { %v1295_v24 = vpop.permute.xlu0 %1294 }
0x1bce   :  { %v1297_v25 = vmul.f32 %v1295_v24, %v1286_v10 }
0x1bd0   :  { %1299 = vrot.lane.b32.xlu2 %v1297_v25, %s2178_s25 }
0x1c2a   :  { %v1300_v28 = vpop.permute.xlu2 %1299 }
0x1c2b   :  { %v1302_v30 = vadd.f32 %v1300_v28, %v1292_v27 }
0x1c2d   :  { %2143 = vtanh.f32 %v1302_v30  ;;  %1310 = vrot.lane.b32.xlu2 %v1302_v30, %s2179_s30 }
0x1c33   :  { %v2144_v31 = vpop.eup %2143 }
0x1c34   :  { %1305 = vrot.lane.b32.xlu0 %v2144_v31, %s2177_s3  ;;  %v2605_v31 = vld [vmem:[%s2709_s10] ss:$0 sm:$0xff] }
0x1c87   :  { %v1311_v32 = vpop.permute.xlu2 %1310 }
0x1c88   :  { %1313 = vst.msk [vmem:[#allocation5] sm:$0xff] %vm95_vm0, %v1311_v32 }
0x1c8f   :  { %v1377_v38 = vld [vmem:[#allocation5] sm:$0xff] }
0x1ca6   :  { %v1306_v36 = vpop.permute.xlu0 %1305 }
0x1ca7   :  { %v1308_v37 = vmul.f32 %v1306_v36, %v1286_v10  ;;  %v939_v10 = vadd.f32 %v2496_v33, %v938_v23 }
0x1ca9   :  { %1315 = vrot.lane.b32.xlu1 %v1308_v37, %s2178_s25 }
0x1cb1   :  { %1379 = vrot.lane.b32.xlu1 %v1377_v38, %s2178_s25 }
0x1d1b   :  { %v1316_v40 = vpop.permute.xlu1 %1315 }
0x1d1c   :  { %1318 = vst.msk [vmem:[#allocation4] sm:$0xff] %vm95_vm0, %v1316_v40 }
0x1d1d   :  { %1319 = vst.msk [vmem:[#allocation2 + $0x18] sm:$0xff] %vm95_vm0, %v1316_v40 }
0x1d23   :  { %v1321_v41 = vld [vmem:[#allocation4] sm:$0xff]  ;;  %v1380_v62 = vpop.permute.xlu1 %1379 }
0x1d24   :  { %v1322_v42 = vpack.c.bf16 %v1321_v41, %v1321_v41  ;;  %v1689_v20 = vld [vmem:[#allocation2 + $0x18] sm:$0xff] }
0x1d25   :  { %v1695_v22 = vpack.c.bf16 %v1689_v20, %v1688_v21 }
0x1d26   :  { %1949 = vmatmul.msk.bf16.vlgmr.msrb.gmra.mxu2 %vm95_vm0, %v1322_v42 }
0x1da9   :  { %v1351_v55 = vpop.f32.mrf.mxu2 }
0x1daa   :  { %v1355_v45 = vadd.f32 %v1351_v55, %v937_v44 }
0x1dac   :  { %v1950_v46 = vmul.f32 -1.442695, %v1355_v45 }
0x1dae   :  { %2145 = vpow2.f32 %v1950_v46 }
0x1db1   :  { %v1353_v47 = vpop.f32.mrf.mxu2 }
0x1db4   :  { %v2146_v48 = vpop.eup %2145 }
0x1db5   :  { %v1360_v9 = vadd.f32 1.0, %v2146_v48 }
0x1db7   :  { %2147 = vrcp.f32 %v1360_v9  ;;  %v1372_v52 = vand.u32 2147483648, %v1360_v9  ;;  %v1370_v56 = vand.u32 2147483647, %v1360_v9  ;;  %vm1366_vm11 = vweird.f32 %v1360_v9 }
0x1db8   :  { %2149 = vtanh.f32 %v1355_v45 }
0x1db9   :  { %v1373_v34 = vor.u32 1.1754944e-38, %v1372_v52  ;;  %vm1371_vm13 = vcmp.eq.f32.partialorder %v1370_v56, 8.507059e+37 }
0x1dbd   :  { %v2148_v49 = vpop.eup %2147 }
0x1dbe   :  { %v1362_v50 = vmul.f32 %v2148_v49, %v1360_v9  ;;  %vm1367_vm10 = vweird.f32 %v2148_v49  ;;  %v2150_v58 = vpop.eup %2149 }
0x1dbf   :  { %vm1368_vm12 = vmor %vm1366_vm11, %vm1367_vm10 }
0x1dc0   :  { %v1363_v51 = vsub.f32 1.0, %v1362_v50 }
0x1dc2   :  { %v1364_v53 = vmul.f32 %v2148_v49, %v1363_v51 }
0x1dc4   :  { %v1365_v11 = vadd.f32 %v2148_v49, %v1364_v53 }
0x1dc6   :  { %v1369_v57 = vsel %vm1368_vm12, %v2148_v49, %v1365_v11 }
0x1dc7   :  { %v1374_v59 = vsel %vm1371_vm13, %v1373_v34, %v1369_v57 }
0x1dc8   :  { %v1376_v60 = vsel %vm2289_vm4, %v2150_v58, %v1374_v59 }
0x1dc9   :  { %1384 = vrot.lane.b32.xlu0 %v1376_v60, %s2177_s3  ;;  %v1382_v63 = vmul.f32 %v1380_v62, %v1376_v60 }
0x1e3b   :  { %v1385_v61 = vpop.permute.xlu0 %1384 }
0x1e3c   :  { %v1387_v54 = vmul.f32 %v1385_v61, %v1376_v60 }
0x1e3e   :  { %1389 = vrot.lane.b32.xlu2 %v1387_v54, %s2178_s25 }
0x1e98   :  { %v1390_v0 = vpop.permute.xlu2 %1389 }
0x1e99   :  { %v1392_v1 = vadd.f32 %v1390_v0, %v1382_v63  ;;  %v2031_v63 = vld [vmem:[%s2706_s5] sm:$0xff] }
0x1e9b   :  { %2151 = vtanh.f32 %v1392_v1  ;;  %1400 = vrot.lane.b32.xlu2 %v1392_v1, %s2179_s30 }
0x1ea1   :  { %v2152_v2 = vpop.eup %2151 }
0x1ea2   :  { %1395 = vrot.lane.b32.xlu0 %v2152_v2, %s2177_s3 }
0x1ef5   :  { %v1401_v3 = vpop.permute.xlu2 %1400 }
0x1ef6   :  { %1403 = vst.msk [vmem:[#allocation5] sm:$0xff] %vm95_vm0, %v1401_v3 }
0x1efd   :  { %v1467_v7 = vld [vmem:[#allocation5] sm:$0xff] }
0x1f14   :  { %v1396_v5 = vpop.permute.xlu0 %1395 }
0x1f15   :  { %v1398_v6 = vmul.f32 %v1396_v5, %v1376_v60  ;;  %v2032_v60 = vld [vmem:[%s2706_s5 + $0x8] sm:$0xff] }
0x1f16   :  { %1528 = vmatpush.bf16.msra.mxu1 %v2032_v60 }
0x1f17   :  { %1405 = vrot.lane.b32.xlu1 %v1398_v6, %s2178_s25  ;;  %v941_v6 = vpop.f32.mrf.mxu3 }
0x1f1a   :  { %1529 = vmatpush.bf16.msra.mxu1 %v2031_v63 }
0x1f1f   :  { %1469 = vrot.lane.b32.xlu1 %v1467_v7, %s2178_s25  ;;  %v942_v7 = vadd.f32 %v2496_v33, %v941_v6 }
0x1f89   :  { %v1406_v14 = vpop.permute.xlu1 %1405 }
0x1f8a   :  { %1408 = vst.msk [vmem:[#allocation4] sm:$0xff] %vm95_vm0, %v1406_v14 }
0x1f8b   :  { %1409 = vst.msk [vmem:[#allocation2 + $0x20] sm:$0xff] %vm95_vm0, %v1406_v14 }
0x1f91   :  { %v1411_v15 = vld [vmem:[#allocation4] sm:$0xff]  ;;  %v1470_v56 = vpop.permute.xlu1 %1469 }
0x1f92   :  { %v1412_v16 = vpack.c.bf16 %v1411_v15, %v1411_v15  ;;  %v1690_v3 = vld [vmem:[#allocation2 + $0x20] sm:$0xff] }
0x1f94   :  { %1959 = vmatmul.msk.bf16.vlgmr.msra.gmra.mxu0 %vm95_vm0, %v1412_v16 }
0x1fa4   :  { %1991 = vmatmul.msk.bf16.vlgmr.msrb.gmra.mxu0 %vm95_vm0, %v1694_v19 }
0x1fb4   :  { %1992 = vmatmul.msk.bf16.gmra.mxu0 %vm95_vm0, %v1695_v22 }
0x2011   :  { %v1441_v24 = vpop.f32.mrf.mxu0 }
0x2012   :  { %v1445_v25 = vadd.f32 %v1441_v24, %v939_v10 }
0x2014   :  { %v1960_v26 = vmul.f32 -1.442695, %v1445_v25 }
0x2016   :  { %2153 = vpow2.f32 %v1960_v26 }
0x2019   :  { %v1443_v27 = vpop.f32.mrf.mxu0 }
0x201c   :  { %v2154_v28 = vpop.eup %2153 }
0x201d   :  { %v1450_v30 = vadd.f32 1.0, %v2154_v28 }
0x201f   :  { %2155 = vrcp.f32 %v1450_v30  ;;  %v1462_v40 = vand.u32 2147483648, %v1450_v30  ;;  %v1460_v43 = vand.u32 2147483647, %v1450_v30  ;;  %vm1456_vm15 = vweird.f32 %v1450_v30 }
0x2020   :  { %2157 = vtanh.f32 %v1445_v25 }
0x2021   :  { %v1739_v32 = vpop.f32.mrf.mxu0  ;;  %v1463_v55 = vor.u32 1.1754944e-38, %v1462_v40  ;;  %vm1461_vm2 = vcmp.eq.f32.partialorder %v1460_v43, 8.507059e+37 }
0x2022   :  { %v1740_v35 = vadd.f32 %v2605_v31, %v1739_v32 }
0x2024   :  { %1759 = vst [vmem:[%s2710_s11] sm:$0xff] %v1740_v35 }
0x2025   :  { %v2156_v36 = vpop.eup %2155 }
0x2026   :  { %v1452_v37 = vmul.f32 %v2156_v36, %v1450_v30  ;;  %vm1457_vm14 = vweird.f32 %v2156_v36  ;;  %v2158_v46 = vpop.eup %2157 }
0x2027   :  { %vm1458_vm1 = vmor %vm1456_vm15, %vm1457_vm14 }
0x2028   :  { %v1453_v38 = vsub.f32 1.0, %v1452_v37 }
0x2029   :  { %v1741_v39 = vpop.f32.mrf.mxu0 }
0x202a   :  { %v1742_v41 = vadd.f32 %v2605_v31, %v1741_v39  ;;  %v1454_v42 = vmul.f32 %v2156_v36, %v1453_v38 }
0x202c   :  { %1760 = vst [vmem:[%s2710_s11 + $0x8] sm:$0xff] %v1742_v41  ;;  %v1455_v44 = vadd.f32 %v2156_v36, %v1454_v42 }
0x202e   :  { %v1459_v45 = vsel %vm1458_vm1, %v2156_v36, %v1455_v44  ;;  %v2034_v44 = vld [vmem:[%s2706_s5 + $0x8] sm:$0xff] }
0x202f   :  { %v1464_v47 = vsel %vm1461_vm2, %v1463_v55, %v1459_v45  ;;  %1618 = vmatpush.bf16.msra.mxu2 %v2034_v44 }
0x2030   :  { %v1466_v48 = vsel %vm2289_vm4, %v2158_v46, %v1464_v47  ;;  %v2033_v47 = vld [vmem:[%s2706_s5] sm:$0xff] }
0x2031   :  { %1474 = vrot.lane.b32.xlu0 %v1466_v48, %s2177_s3  ;;  %v1744_v9 = vpop.f32.mrf.mxu0  ;;  %v1472_v11 = vmul.f32 %v1470_v56, %v1466_v48 }
0x2032   :  { %v1745_v49 = vadd.f32 %v2605_v31, %v1744_v9 }
0x2033   :  { %1619 = vmatpush.bf16.msra.mxu2 %v2033_v47 }
0x2034   :  { %1761 = vst [vmem:[%s2710_s11 + $0x10] sm:$0xff] %v1745_v49 }
0x2039   :  { %v1746_v50 = vpop.f32.mrf.mxu0 }
0x203a   :  { %v1747_v51 = vadd.f32 %v2605_v31, %v1746_v50  ;;  %v943_v50 = vpop.f32.mrf.mxu3 }
0x203c   :  { %1762 = vst [vmem:[%s2710_s11 + $0x18] sm:$0xff] %v1747_v51  ;;  %v944_v51 = vadd.f32 %v2496_v33, %v943_v50 }
0x20a3   :  { %v1475_v52 = vpop.permute.xlu0 %1474 }
0x20a4   :  { %v1477_v53 = vmul.f32 %v1475_v52, %v1466_v48 }
0x20a6   :  { %1479 = vrot.lane.b32.xlu2 %v1477_v53, %s2178_s25 }
0x2100   :  { %v1480_v34 = vpop.permute.xlu2 %1479 }
0x2101   :  { %v1482_v57 = vadd.f32 %v1480_v34, %v1472_v11 }
0x2103   :  { %2159 = vtanh.f32 %v1482_v57  ;;  %1490 = vrot.lane.b32.xlu2 %v1482_v57, %s2179_s30 }
0x2109   :  { %v2160_v58 = vpop.eup %2159 }
0x210a   :  { %1485 = vrot.lane.b32.xlu0 %v2160_v58, %s2177_s3 }
0x215d   :  { %v1491_v59 = vpop.permute.xlu2 %1490 }
0x215e   :  { %1493 = vst.msk [vmem:[#allocation5] sm:$0xff] %vm95_vm0, %v1491_v59 }
0x2165   :  { %v1557_v62 = vld [vmem:[#allocation5] sm:$0xff] }
0x217c   :  { %v1486_v61 = vpop.permute.xlu0 %1485 }
0x217d   :  { %v1488_v54 = vmul.f32 %v1486_v61, %v1466_v48 }
0x217f   :  { %1495 = vrot.lane.b32.xlu1 %v1488_v54, %s2178_s25 }
0x2187   :  { %1559 = vrot.lane.b32.xlu1 %v1557_v62, %s2178_s25 }
0x21f1   :  { %v1496_v0 = vpop.permute.xlu1 %1495 }
0x21f2   :  { %1498 = vst.msk [vmem:[#allocation4] sm:$0xff] %vm95_vm0, %v1496_v0 }
0x21f3   :  { %1499 = vst.msk [vmem:[#allocation2 + $0x28] sm:$0xff] %vm95_vm0, %v1496_v0 }
0x21f9   :  { %v1501_v1 = vld [vmem:[#allocation4] sm:$0xff]  ;;  %v1560_v38 = vpop.permute.xlu1 %1559 }
0x21fa   :  { %v1502_v2 = vpack.c.bf16 %v1501_v1, %v1501_v1  ;;  %v1691_v4 = vld [vmem:[#allocation2 + $0x28] sm:$0xff] }
0x21fb   :  { %v1696_v5 = vpack.c.bf16 %v1691_v4, %v1690_v3 }
0x21fc   :  { %1969 = vmatmul.msk.bf16.vlgmr.msra.gmra.mxu1 %vm95_vm0, %v1502_v2 }
0x21fd   :  { %1993 = vmatmul.msk.bf16.gmra.mxu0 %vm95_vm0, %v1696_v5 }
0x2279   :  { %v1531_v8 = vpop.f32.mrf.mxu1 }
0x227a   :  { %v1535_v12 = vadd.f32 %v1531_v8, %v942_v7  ;;  %v1749_v13 = vpop.f32.mrf.mxu0 }
0x227b   :  { %v1750_v14 = vadd.f32 %v2605_v31, %v1749_v13 }
0x227c   :  { %v1970_v15 = vmul.f32 -1.442695, %v1535_v12 }
0x227d   :  { %1763 = vst [vmem:[%s2710_s11 + $0x20] sm:$0xff] %v1750_v14 }
0x227e   :  { %2161 = vpow2.f32 %v1970_v15 }
0x2281   :  { %v1533_v16 = vpop.f32.mrf.mxu1 }
0x2282   :  { %v1751_v17 = vpop.f32.mrf.mxu0 }
0x2283   :  { %v1752_v18 = vadd.f32 %v2605_v31, %v1751_v17 }
0x2284   :  { %v2162_v19 = vpop.eup %2161 }
0x2285   :  { %v1540_v20 = vadd.f32 1.0, %v2162_v19  ;;  %1764 = vst [vmem:[%s2710_s11 + $0x28] sm:$0xff] %v1752_v18 }
0x2287   :  { %2163 = vrcp.f32 %v1540_v20  ;;  %v1552_v10 = vand.u32 2147483648, %v1540_v20  ;;  %v1550_v25 = vand.u32 2147483647, %v1540_v20  ;;  %vm1546_vm5 = vweird.f32 %v1540_v20 }
0x2288   :  { %2165 = vtanh.f32 %v1535_v12 }
0x2289   :  { %v1553_v27 = vor.u32 1.1754944e-38, %v1552_v10  ;;  %vm1551_vm7 = vcmp.eq.f32.partialorder %v1550_v25, 8.507059e+37 }
0x228d   :  { %v2164_v21 = vpop.eup %2163 }
0x228e   :  { %v1542_v22 = vmul.f32 %v2164_v21, %v1540_v20  ;;  %vm1547_vm3 = vweird.f32 %v2164_v21  ;;  %v2166_v30 = vpop.eup %2165 }
0x228f   :  { %vm1548_vm6 = vmor %vm1546_vm5, %vm1547_vm3 }
0x2290   :  { %v1543_v23 = vsub.f32 1.0, %v1542_v22 }
0x2292   :  { %v1544_v24 = vmul.f32 %v2164_v21, %v1543_v23 }
0x2294   :  { %v1545_v26 = vadd.f32 %v2164_v21, %v1544_v24 }
0x2296   :  { %v1549_v28 = vsel %vm1548_vm6, %v2164_v21, %v1545_v26 }
0x2297   :  { %v1554_v32 = vsel %vm1551_vm7, %v1553_v27, %v1549_v28 }
0x2298   :  { %v1556_v35 = vsel %vm2289_vm4, %v2166_v30, %v1554_v32 }
0x2299   :  { %1564 = vrot.lane.b32.xlu0 %v1556_v35, %s2177_s3  ;;  %v1562_v39 = vmul.f32 %v1560_v38, %v1556_v35 }
0x230b   :  { %v1565_v36 = vpop.permute.xlu0 %1564 }
0x230c   :  { %v1567_v37 = vmul.f32 %v1565_v36, %v1556_v35 }
0x230e   :  { %1569 = vrot.lane.b32.xlu2 %v1567_v37, %s2178_s25 }
0x2368   :  { %v1570_v40 = vpop.permute.xlu2 %1569 }
0x2369   :  { %v1572_v41 = vadd.f32 %v1570_v40, %v1562_v39 }
0x236b   :  { %2167 = vtanh.f32 %v1572_v41  ;;  %1580 = vrot.lane.b32.xlu2 %v1572_v41, %s2179_s30 }
0x2371   :  { %v2168_v42 = vpop.eup %2167 }
0x2372   :  { %1575 = vrot.lane.b32.xlu0 %v2168_v42, %s2177_s3 }
0x23c5   :  { %v1581_v43 = vpop.permute.xlu2 %1580 }
0x23c6   :  { %1583 = vst.msk [vmem:[#allocation5] sm:$0xff] %vm95_vm0, %v1581_v43 }
0x23cd   :  { %v1647_v46 = vld [vmem:[#allocation5] sm:$0xff] }
0x23e4   :  { %v1576_v55 = vpop.permute.xlu0 %1575 }
0x23e5   :  { %v1578_v45 = vmul.f32 %v1576_v55, %v1556_v35 }
0x23e7   :  { %1585 = vrot.lane.b32.xlu1 %v1578_v45, %s2178_s25 }
0x23ef   :  { %1649 = vrot.lane.b32.xlu1 %v1647_v46, %s2178_s25 }
0x2459   :  { %v1586_v48 = vpop.permute.xlu1 %1585 }
0x245a   :  { %1588 = vst.msk [vmem:[#allocation4] sm:$0xff] %vm95_vm0, %v1586_v48 }
0x245b   :  { %1589 = vst.msk [vmem:[#allocation2 + $0x30] sm:$0xff] %vm95_vm0, %v1586_v48 }
0x2461   :  { %v1591_v9 = vld [vmem:[#allocation4] sm:$0xff]  ;;  %v1650_v6 = vpop.permute.xlu1 %1649 }
0x2462   :  { %v1592_v49 = vpack.c.bf16 %v1591_v9, %v1591_v9  ;;  %v1692_v19 = vld [vmem:[#allocation2 + $0x30] sm:$0xff] }
0x2464   :  { %1979 = vmatmul.msk.bf16.vlgmr.msra.gmra.mxu2 %vm95_vm0, %v1592_v49 }
0x24e7   :  { %v1621_v52 = vpop.f32.mrf.mxu2 }
0x24e8   :  { %v1625_v53 = vadd.f32 %v1621_v52, %v944_v51 }
0x24ea   :  { %v1980_v56 = vmul.f32 -1.442695, %v1625_v53 }
0x24ec   :  { %2169 = vpow2.f32 %v1980_v56 }
0x24ef   :  { %v1623_v11 = vpop.f32.mrf.mxu2 }
0x24f2   :  { %v2170_v34 = vpop.eup %2169 }
0x24f3   :  { %v1630_v57 = vadd.f32 1.0, %v2170_v34 }
0x24f5   :  { %2171 = vrcp.f32 %v1630_v57  ;;  %v1642_v61 = vand.u32 2147483648, %v1630_v57  ;;  %v1640_v62 = vand.u32 2147483647, %v1630_v57  ;;  %vm1636_vm9 = vweird.f32 %v1630_v57 }
0x24f6   :  { %2173 = vtanh.f32 %v1625_v53 }
0x24f7   :  { %v1643_v33 = vor.u32 1.1754944e-38, %v1642_v61  ;;  %vm1641_vm11 = vcmp.eq.f32.partialorder %v1640_v62, 8.507059e+37 }
0x24fb   :  { %v2172_v58 = vpop.eup %2171 }
0x24fc   :  { %v1632_v59 = vmul.f32 %v2172_v58, %v1630_v57  ;;  %vm1637_vm8 = vweird.f32 %v2172_v58  ;;  %v2174_v1 = vpop.eup %2173 }
0x24fd   :  { %vm1638_vm10 = vmor %vm1636_vm9, %vm1637_vm8 }
0x24fe   :  { %v1633_v60 = vsub.f32 1.0, %v1632_v59 }
0x2500   :  { %v1634_v54 = vmul.f32 %v2172_v58, %v1633_v60 }
0x2502   :  { %v1635_v63 = vadd.f32 %v2172_v58, %v1634_v54 }
0x2504   :  { %v1639_v0 = vsel %vm1638_vm10, %v2172_v58, %v1635_v63 }
0x2505   :  { %v1644_v2 = vsel %vm1641_vm11, %v1643_v33, %v1639_v0 }
0x2506   :  { %v1646_v3 = vsel %vm2289_vm4, %v2174_v1, %v1644_v2 }
0x2507   :  { %1654 = vrot.lane.b32.xlu0 %v1646_v3, %s2177_s3  ;;  %v1652_v7 = vmul.f32 %v1650_v6, %v1646_v3 }
0x2579   :  { %v1655_v4 = vpop.permute.xlu0 %1654 }
0x257a   :  { %v1657_v5 = vmul.f32 %v1655_v4, %v1646_v3 }
0x257c   :  { %1659 = vrot.lane.b32.xlu2 %v1657_v5, %s2178_s25 }
0x25d6   :  { %v1660_v8 = vpop.permute.xlu2 %1659 }
0x25d7   :  { %v1662_v12 = vadd.f32 %v1660_v8, %v1652_v7 }
0x25d9   :  { %2175 = vtanh.f32 %v1662_v12  ;;  %1670 = vrot.lane.b32.xlu2 %v1662_v12, %s2179_s30 }
0x25df   :  { %v2176_v13 = vpop.eup %2175 }
0x25e0   :  { %1665 = vrot.lane.b32.xlu0 %v2176_v13, %s2177_s3 }
0x2633   :  { %v1671_v14 = vpop.permute.xlu2 %1670 }
0x2634   :  { %1673 = vst.msk [vmem:[#allocation5] sm:$0xff] %vm95_vm0, %v1671_v14 }
0x263b   :  { %v1683_v29 = vld [vmem:[#allocation5] sm:$0xff] }
0x263c   :  { %1982 = vst.msk [vmem:[%s2705_s13 + $0x8] sm:$0xff] %vm95_vm0, %v1683_v29 }
0x2652   :  { %v1666_v15 = vpop.permute.xlu0 %1665 }
0x2653   :  { %v1668_v16 = vmul.f32 %v1666_v15, %v1646_v3 }
0x2655   :  { %1675 = vrot.lane.b32.xlu1 %v1668_v16, %s2178_s25 }
0x26c7   :  { %v1676_v17 = vpop.permute.xlu1 %1675 }
0x26c8   :  { %1678 = vst.msk [vmem:[#allocation4] sm:$0xff] %vm95_vm0, %v1676_v17 }
0x26c9   :  { %1679 = vst.msk [vmem:[#allocation2 + $0x38] sm:$0xff] %vm95_vm0, %v1676_v17 }
0x26cf   :  { %v1680_v18 = vld [vmem:[#allocation4] sm:$0xff] }
0x26d0   :  { %1981 = vst.msk [vmem:[%s2707_s12 + $0x8] sm:$0xff] %vm95_vm0, %v1680_v18  ;;  %v1693_v20 = vld [vmem:[#allocation2 + $0x38] sm:$0xff] }
0x26d1   :  { %v1697_v21 = vpack.c.bf16 %v1693_v20, %v1692_v19 }
0x26d3   :  { %1994 = vmatmul.msk.bf16.gmra.mxu0 %vm95_vm0, %v1697_v21 }
0x2750   :  { %v1754_v22 = vpop.f32.mrf.mxu0 }
0x2751   :  { %v1755_v23 = vadd.f32 %v2605_v31, %v1754_v22 }
0x2753   :  { %1765 = vst [vmem:[%s2710_s11 + $0x30] sm:$0xff] %v1755_v23 }
0x2758   :  { %v1756_v10 = vpop.f32.mrf.mxu0 }
0x2759   :  { %v1757_v24 = vadd.f32 %v2605_v31, %v1756_v10 }
0x275b   :  { %1766 = vst [vmem:[%s2710_s11 + $0x38] sm:$0xff] %v1757_v24 }

</bundles_post_ra>
